<compile_context>
chip_gen: v6e
topology: v6e:2x2x1
jax: 0.10.0
libtpu: 0.0.40
codegen_flags: <defaults>
</compile_context>

<pallas_src>
import jax
import jax.numpy as jnp
from jax.experimental import pallas as pl
from jax.experimental.pallas import tpu as pltpu

# ----------------------------- tuning constants ------------------------------
_SMALL_FALLBACK_BYTES = 256 * 1024      # below this: plain XLA add (fuses; no custom-call overhead)
_TARGET_TILE_BYTES = 2 * 1024 * 1024    # ~2 MiB per array tile -> 6x live = 12 MiB < 16 MiB (v5e scoped VMEM)
_MIN_GRID_STEPS = 4                     # >= 2 * num_cores so v7x megacore shards the row axis
_LANE_CANDIDATES = (32768, 16384, 8192, 4096, 2048, 1024, 512, 256, 128)


# ----------------------------- Pallas kernel ---------------------------------
def _add_kernel(x2_ref, emb_ref, xx_ref):
    # whole VMEM tile, pure VPU elementwise add
    xx_ref[...] = x2_ref[...] + emb_ref[...]


# ----------------------------- layout selection ------------------------------
def _sublane_multiple(dtype):
    itemsize = jnp.dtype(dtype).itemsize
    return max(8, 32 // itemsize)       # f32 -> 8, bf16 -> 16, int8/fp8 -> 32


def _choose_layout(n_elems, dtype):
    """Pick a lane-dense (rows, cols) reshape + tile_rows, or None -> jnp fallback."""
    sub = _sublane_multiple(dtype)
    itemsize = jnp.dtype(dtype).itemsize
    for cols in _LANE_CANDIDATES:                       # widest lane dim first
        if n_elems % cols == 0 and (n_elems // cols) >= sub:
            rows = n_elems // cols
            row_bytes = cols * itemsize
            # ~2 MiB per array tile, rounded down to a legal sublane multiple
            tile = max(sub, (_TARGET_TILE_BYTES // row_bytes) // sub * sub)
            tile = min(tile, rows)
            # keep at least _MIN_GRID_STEPS grid steps when rows permit (v7x: 2 TCs)
            if rows >= _MIN_GRID_STEPS * sub:
                tile = min(tile, max(sub, (rows // _MIN_GRID_STEPS) // sub * sub))
            return rows, cols, tile
    return None


# ----------------------------- wrapper ---------------------------------------
def direct_output_block_forward(x):
    """DirectOutputBlock.forward: x = (x2, embedding) -> (x2, x2 + embedding)."""
    x2, embedding = x

    same_layout = (x2.shape == embedding.shape and x2.dtype == embedding.dtype)
    total_bytes = x2.size * jnp.dtype(x2.dtype).itemsize

    # Broadcast / dtype-promotion cases and tiny tensors: a fused XLA add is
    # strictly faster than a custom call (and matches PyTorch broadcasting).
    if (not same_layout) or total_bytes <= _SMALL_FALLBACK_BYTES:
        return x2, x2 + embedding

    layout = _choose_layout(x2.size, x2.dtype)
    if layout is None:                                   # element count not 128-friendly
        return x2, x2 + embedding

    rows, cols, tile_rows = layout
    x2_2d = x2.reshape(rows, cols)
    emb_2d = embedding.reshape(rows, cols)
    grid = (pl.cdiv(rows, tile_rows),)

    xx_2d = pl.pallas_call(
        _add_kernel,
        out_shape=jax.ShapeDtypeStruct((rows, cols), x2.dtype),
        grid=grid,
        in_specs=[pl.BlockSpec((tile_rows, cols), lambda i: (i, 0)),
                  pl.BlockSpec((tile_rows, cols), lambda i: (i, 0))],
        out_specs=pl.BlockSpec((tile_rows, cols), lambda i: (i, 0)),
        compiler_params=pltpu.CompilerParams(
            dimension_semantics=("parallel",)),          # rows independent -> megacore shard
    )(x2_2d, emb_2d)

    # PyTorch returns x2 by reference; no copy / no kernel needed for it.
    return x2, xx_2d.reshape(x2.shape)


# ----------------------------- main -------------------------------------------
if __name__ == "__main__":
    key = jax.random.PRNGKey(0)
    k1, k2, k3, k4 = jax.random.split(key, 4)

    # --- Pallas path: big enough to exercise the tiled kernel + multi-step grid
    B, S, F = 2, 512, 1024                 # 4 MiB per array (f32)
    x2 = jax.random.normal(k1, (B, S, F), jnp.float32)
    embedding = jax.random.normal(k2, (B, S, F), jnp.float32)

    out_x2, out_xx = direct_output_block_forward((x2, embedding))
    out_x2, out_xx = jax.block_until_ready((out_x2, out_xx))

    ref_xx = x2 + embedding
    assert out_x2.shape == x2.shape and out_xx.shape == x2.shape
    assert bool(jnp.all(out_x2 == x2))
    assert bool(jnp.all(jnp.isfinite(out_xx)))
    assert bool(jnp.allclose(out_xx, ref_xx, rtol=1e-6, atol=1e-6))

    # --- tiny-input fallback path (plain XLA add)
    tx2 = jax.random.normal(k3, (2, 16, 128), jnp.float32)
    temb = jax.random.normal(k4, (2, 16, 128), jnp.float32)
    s_x2, s_xx = jax.block_until_ready(direct_output_block_forward((tx2, temb)))
    assert bool(jnp.all(s_x2 == tx2))
    assert bool(jnp.allclose(s_xx, tx2 + temb, rtol=1e-6, atol=1e-6))

    # --- broadcasting fallback path (PyTorch broadcast semantics)
    b_emb = jax.random.normal(k4, (1, 16, 128), jnp.float32)
    b_x2, b_xx = jax.block_until_ready(direct_output_block_forward((tx2, b_emb)))
    assert b_xx.shape == tx2.shape
    assert bool(jnp.allclose(b_xx, tx2 + b_emb, rtol=1e-6, atol=1e-6))

    print("KERNEL_OK")
</pallas_src>

<mosaic_0001>
module attributes {stable_mosaic.version = 11 : i64} {
  func.func @_add_kernel(%arg0: i32, %arg1: memref<8x32768xf32, #tpu.memory_space<vmem>>, %arg2: memref<8x32768xf32, #tpu.memory_space<vmem>>, %arg3: memref<8x32768xf32, #tpu.memory_space<vmem>>) attributes {dimension_semantics = [#tpu.dimension_semantics<parallel>], iteration_bounds = array<i64: 4>, scalar_prefetch = 0 : i64, scratch_operands = 0 : i64, tpu.core_type = #tpu.core_type<tc>, window_params = [{transform_indices = @transform_0, window_bounds = array<i64: 8, 32768>}, {transform_indices = @transform_1, window_bounds = array<i64: 8, 32768>}, {transform_indices = @transform_2, window_bounds = array<i64: 8, 32768>}]} {
    %c0 = arith.constant 0 : index
    %c0_0 = arith.constant 0 : index
    %0 = vector.load %arg1[%c0, %c0_0] : memref<8x32768xf32, #tpu.memory_space<vmem>>, vector<8x32768xf32>
    %c0_1 = arith.constant 0 : index
    %c0_2 = arith.constant 0 : index
    %1 = vector.load %arg2[%c0_1, %c0_2] : memref<8x32768xf32, #tpu.memory_space<vmem>>, vector<8x32768xf32>
    %2 = arith.addf %0, %1 : vector<8x32768xf32>
    %c0_3 = arith.constant 0 : index
    %c0_4 = arith.constant 0 : index
    %3 = vector.load %arg3[%c0_3, %c0_4] : memref<8x32768xf32, #tpu.memory_space<vmem>>, vector<8x32768xf32>
    tpu.vector_store %arg3[%c0_3, %c0_4], %2 {strides = array<i32>} : memref<8x32768xf32, #tpu.memory_space<vmem>>, vector<8x32768xf32>,
    return
  }
  func.func @transform_0(%arg0: i32) -> (i32, i32) {
    %c0_i32 = arith.constant 0 : i32
    %c0_i32_0 = arith.constant 0 : i32
    return %arg0, %c0_i32 : i32, i32
  }
  func.func @transform_1(%arg0: i32) -> (i32, i32) {
    %c0_i32 = arith.constant 0 : i32
    %c0_i32_0 = arith.constant 0 : i32
    return %arg0, %c0_i32 : i32, i32
  }
  func.func @transform_2(%arg0: i32) -> (i32, i32) {
    %c0_i32 = arith.constant 0 : i32
    %c0_i32_0 = arith.constant 0 : i32
    return %arg0, %c0_i32 : i32, i32
  }
}

</mosaic_0001>

<bundles_post_ra>
// kernel: tpu_custom_call.1
= control target key start
LH: loop header
LB: loop body
LE: loop exit
PB: predicated region body
PF: predicated region fallthrough
CT: control target
= control target key end

     0   :  { %7 = vsyncpa [#allocation3], 0  ;;  %s2525_s0 = inlined_call_operand.hbm [shape: f32[32,32768], index: 0, kind: input, shape index: {}]   ;;  %s2526_s1 = inlined_call_operand.hbm [shape: f32[32,32768], index: 1, kind: input, shape index: {}]   ;;  %s2527_s2 = inlined_call_operand.hbm [shape: f32[32,32768], index: 2, kind: output, shape index: {}]  }
   0x1   :  { %9 = vsyncpa [#allocation3 + $0x1], 0 }
   0x2   :  { %10 = vsyncpa [#allocation6], 0 }
   0x3   :  { %12 = vsyncpa [#allocation6 + $0x1], 0 }
   0x4   :  { %13 = vsyncpa [#allocation4], 0 }
   0x5   :  { %15 = vsyncpa [#allocation4 + $0x1], 0  ;;  %s1546_s9 = smov 0   ;;  %s1548_s10 = smov 0  }
   0x6   :  { %s1550_s11 = smov 0   ;;  %s1552_s12 = smov 0  }
   0x7 LB: > { %s1567_s13 = sadd.s32 4294967295, %s1526_s12   ;;  %s1330_s14 = sadd.s32 4294967294, %s1526_s12   ;;  %s1526_s12 = sphi %s1552_s12, %s2545_s12   ;;  %s1522_s11 = sphi %s1550_s11, %s2544_s11   ;;  %s1518_s10 = sphi %s1548_s10, %s2543_s10   ;;  %s1514_s9 = sphi %s1546_s9, %s2542_s9  }
   0x8   : > { %s1571_s15 = sadd.s32 1, %s1526_s12   ;;  %s28_s16 = sadd.s32 1, %s1522_s11 }
   0x9   : > { %s25_s17 = ssub.s32 %s1526_s12, %s1571_s15  ;;  %p35_p0 = scmp.ne.s32.totalorder %s1522_s11, %s1518_s10 }
   0xa   : > { %p26_p1 = scmp.eq.s32.totalorder %s25_s17, 0  ;;  %p36_p2 = scmp.eq.s32.totalorder %s1526_s12, 0 }
   0xb   : > { %p41_p3 = scmp.ne.s32.totalorder %s1518_s10, %s1514_s9  ;;  %p42_p4 = scmp.eq.s32.totalorder %s1567_s13, 0 }
   0xc   : > { %s1583_s18 = scalar_select %p26_p1, %s1522_s11, %s28_s16  }
   0xd   : > { %p1585_p5 = por %p36_p2, %p35_p0  ;;  %p1589_p6 = por %p42_p4, %p41_p3 }
   0xe   : > { %p91_p7 = scmp.eq.s32.totalorder %s1567_s13, 3  ;;  %p97_p8 = scmp.eq.s32.totalorder %s1330_s14, 3 }
   0xf   : > { %s2531_s20 = scalar_select %p1589_p6, 1, 0 }
  0x10   : > { %p1368_p9 = scmp.lt.s32.totalorder %s1526_s12, 4  ;;  %p1595_p10 = por %p91_p7, %p35_p0 }
  0x11   : > { %p1599_p11 = por %p97_p8, %p41_p3  ;;  %s1604_s23 = sand.u32 1, %s1522_s11  }
  0x12   : > { %s2532_s21 = scalar_select %p1595_p10, 1, 0 }
  0x13   : > { %s2533_s22 = scalar_select %p1599_p11, 1, 0 }
  0x14   : > { %s1348_s24 = sshll.u32 %s1526_s12, 15  ;;  %s1333_s25 = sshll.u32 %s1604_s23, 11 }
  0x15   : > { %s1613_s28 = scalar_lea.hbm %s2525_s0, %s1348_s24  ;;  %s121_s29 = scalar_lea.vmem [#allocation2], %s1333_s25 }
  0x16   : > { %s129_s30 = sshll.u32 %s121_s29, 4  ;;  %p1619_p12 = pnand %p1368_p9, %p1585_p5  ;;  %s1623_s30 = int_to_ptr.vmem [resolvable:$true] %s129_s30 }
  0x17   : > { %s118_s4 = scalar_lea.sflag [#allocation3], %s1604_s23  ;;  %s1402_s5 = scalar_lea.hbm %s1613_s28, 32768 }
  0x18   : > { %p1403_p1 = scmp.ne.s32.totalorder %s1613_s28, %s1402_s5  ;;  %p1404_p2 = pneg %p1619_p12 }
  0x19   : > { %s1407_s8 = scalar_lea.hbm %s2525_s0, 131072  ;;  %p1408_p5 = scmp.lt.s32.totalorder %s1613_s28, %s2525_s0 }
  0x1a   : > { %p1405_p3 = pnand %p1404_p2, %p1403_p1  ;;  %p1409_p7 = scmp.lt.s32.totalorder %s1407_s8, %s1402_s5 }
  0x1c   : > { %p1406_p4 = pneg %p1405_p3  ;;  %p1410_p8 = por %p1409_p7, %p1408_p5 }
  0x1e   : > { %p1411_p9 = pnand %p1410_p8, %p1406_p4 }
  0x20   : > { %1414 = shalt.err (!%p1411_p9)
}
  0x21   : > { %s1415_s17 = scalar_lea.vmem %s1623_s30, 32768  ;;  %s1528_s19 = smov [#allocation2]  }
  0x22   : > { %p1416_p13 = scmp.ne.s32.totalorder %s1623_s30, %s1415_s17  ;;  %s1420_s26 = sshll.u32 %s1528_s19, 4  ;;  %s1421_s26 = int_to_ptr.vmem [resolvable:$false] %s1420_s26 }
  0x23   : > { %s1422_s27 = scalar_lea.vmem %s1421_s26, 65536  ;;  %p1423_p0 = scmp.lt.s32.totalorder %s1623_s30, %s1421_s26 }
  0x24   : > { %p1418_p1 = pnand %p1416_p13, %p1404_p2  ;;  %p1424_p11 = scmp.lt.s32.totalorder %s1422_s27, %s1415_s17 }
  0x26   : > { %p1419_p3 = pneg %p1418_p1  ;;  %p1425_p10 = por %p1424_p11, %p1423_p0 }
  0x28   : > { %p1426_p5 = pnand %p1425_p10, %p1419_p3 }
  0x2a   : > { %1429 = shalt.err (!%p1426_p5)
}
  0x2b   : > { %1360 = dma.hbm_to_vmem [thread:$0]  (!%p1619_p12), %s1613_s28, 32768, %s1623_s30, %s118_s4  }
  0x2c   : > { %p2535_p13 = scmp.lt.s32.totalorder %s1526_s12, 5  ;;  %p2536_p4 = scmp.ge.s32.totalorder %s1526_s12, 1 }
  0x2d   : > { %s1665_s7 = scalar_lea.hbm %s2526_s1, %s1348_s24  ;;  %s140_s8 = scalar_lea.vmem [#allocation5], %s1333_s25 }
  0x2e   : > { %p1656_p7 = pnand %p2536_p4, %p2535_p13  ;;  %s148_s14 = sshll.u32 %s140_s8, 4  ;;  %s149_s14 = int_to_ptr.vmem [resolvable:$true] %s148_s14 }
  0x2f   : > { %s137_s28 = scalar_lea.sflag [#allocation6], %s1604_s23  ;;  %s1430_s30 = scalar_lea.hbm %s1665_s7, 32768 }
  0x30   : > { %s2537_s29 = scalar_select %p1656_p7, 1, 0 }
  0x31   : > { %p1431_p10 = scmp.ne.s32.totalorder %s1665_s7, %s1430_s30  ;;  %s1435_s17 = scalar_lea.hbm %s2526_s1, 131072 }
  0x32   : > { %p1436_p8 = scmp.lt.s32.totalorder %s1665_s7, %s2526_s1  ;;  %p1437_p9 = scmp.lt.s32.totalorder %s1435_s17, %s1430_s30 }
  0x33   : > { %p1433_p11 = pnand %p1431_p10, %p1404_p2 }
  0x34   : > { %p1438_p1 = por %p1437_p9, %p1436_p8 }
  0x35   : > { %p1434_p0 = pneg %p1433_p11 }
  0x37   : > { %p1439_p3 = pnand %p1438_p1, %p1434_p0 }
  0x39   : > { %1442 = shalt.err (!%p1439_p3)
}
  0x3a   : > { %s1443_s25 = scalar_lea.vmem %s149_s14, 32768  ;;  %s1529_s23 = smov [#allocation5]  }
  0x3b   : > { %p1444_p5 = scmp.ne.s32.totalorder %s149_s14, %s1443_s25  ;;  %s1448_s26 = sshll.u32 %s1529_s23, 4  ;;  %s1449_s26 = int_to_ptr.vmem [resolvable:$false] %s1448_s26 }
  0x3c   : > { %s1450_s27 = scalar_lea.vmem %s1449_s26, 65536  ;;  %p1451_p10 = scmp.lt.s32.totalorder %s149_s14, %s1449_s26 }
  0x3d   : > { %p1446_p13 = pnand %p1444_p5, %p1404_p2  ;;  %p1452_p11 = scmp.lt.s32.totalorder %s1450_s27, %s1443_s25 }
  0x3f   : > { %p1447_p4 = pneg %p1446_p13  ;;  %p1453_p6 = por %p1452_p11, %p1451_p10 }
  0x41   : > { %p1454_p7 = pnand %p1453_p6, %p1447_p4 }
  0x43   : > { %1457 = shalt.err (!%p1454_p7)
}
  0x44   : > { %1363 = dma.hbm_to_vmem [thread:$0]  (!%p1619_p12), %s1665_s7, 32768, %s149_s14, %s137_s28  }
  0x45   : > { %p2538_p0 = scmp.ne.s32.totalorder %s2537_s29, 0 }
  0x46   : > { %s1691_s5 = sand.u32 (!%p2538_p0), 1, %s1518_s10   ;;  %p2539_p2 = scmp.ne.s32.totalorder (!%p2538_p0), %s2531_s20, 0 }
  0x47   : > { %157 = sbr.rel (%p2538_p0) target bundleno = 294 (0x126), region = 28  ;;  %s1340_s6 = sshll.u32 (!%p2538_p0), %s1691_s5, 11 }
  0x48   : > { %s160_s8 = scalar_lea.sflag (!%p2538_p0), [#allocation3], %s1691_s5  ;;  %s1695_s30 = scalar_lea.vmem (!%p2538_p0), [#allocation2], %s1340_s6 }
  0x4c   : > { %1501 = dma.done.wait (%p2539_p2), %s160_s8, 32768  }
  0x4d   : > { %1503 = vsyncadd (%p2539_p2), %s160_s8, 4294934528  ;;  %s169_s3 = scalar_lea.sflag [#allocation6], %s1691_s5  ;;  %s1702_s29 = scalar_lea.vmem [#allocation5], %s1340_s6 }
  0x4e   : > { %1505 = dma.done.wait (%p2539_p2), %s169_s3, 32768  }
  0x4f   : > { %1507 = vsyncadd (%p2539_p2), %s169_s3, 4294934528  ;;  %v198_v0 = vld [vmem:[%s1695_s30] sm:$0xff]  ;;  %v199_v2 = vld [vmem:[%s1695_s30 + $0x8] sm:$0xff]  ;;  %s1717_s20 = scalar_lea.vmem [#allocation7], %s1340_s6  ;;  %s1350_s7 = sshll.u32 %s1567_s13, 15 }
  0x50   : > { %v454_v1 = vld [vmem:[%s1702_s29] sm:$0xff]  ;;  %v455_v4 = vld [vmem:[%s1702_s29 + $0x8] sm:$0xff]  ;;  %v200_v5 = vld [vmem:[%s1695_s30 + $0x10] sm:$0xff]  ;;  %s1237_s14 = sshll.u32 %s1717_s20, 4  ;;  %s2480_s4 = scalar_lea.hbm %s2527_s2, %s1350_s7  ;;  %s2482_s14 = int_to_ptr.vmem [resolvable:$true] %s1237_s14 }
  0x51   : > { %v710_v3 = vadd.f32 %v454_v1, %v198_v0  ;;  %v456_v6 = vld [vmem:[%s1702_s29 + $0x10] sm:$0xff]  ;;  %v711_v7 = vadd.f32 %v455_v4, %v199_v2  ;;  %v201_v9 = vld [vmem:[%s1695_s30 + $0x18] sm:$0xff]  ;;  %v202_v11 = vld [vmem:[%s1695_s30 + $0x20] sm:$0xff]  ;;  %s1223_s16 = scalar_lea.sflag [#allocation4], %s1691_s5  ;;  %s1458_s17 = scalar_lea.vmem %s2482_s14, 32768 }
  0x52   : > { %v712_v8 = vadd.f32 %v456_v6, %v200_v5  ;;  %v457_v10 = vld [vmem:[%s1702_s29 + $0x18] sm:$0xff]  ;;  %v458_v13 = vld [vmem:[%s1702_s29 + $0x20] sm:$0xff]  ;;  %v203_v14 = vld [vmem:[%s1695_s30 + $0x28] sm:$0xff]  ;;  %p1459_p6 = scmp.ne.s32.totalorder %s2482_s14, %s1458_s17  ;;  %p2540_p12 = scmp.ne.s32.totalorder %s2532_s21, 0 }
  0x53   : > { %966 = vst [vmem:[%s1717_s20] sm:$0xff] %v710_v3  ;;  %v713_v12 = vadd.f32 %v457_v10, %v201_v9  ;;  %v459_v15 = vld [vmem:[%s1702_s29 + $0x28] sm:$0xff]  ;;  %967 = vst [vmem:[%s1717_s20 + $0x8] sm:$0xff] %v711_v7  ;;  %v714_v16 = vadd.f32 %v458_v13, %v202_v11  ;;  %v204_v18 = vld [vmem:[%s1695_s30 + $0x30] sm:$0xff]  ;;  %s1530_s24 = smov [#allocation7]  }
  0x54   : > { %968 = vst [vmem:[%s1717_s20 + $0x10] sm:$0xff] %v712_v8  ;;  %v715_v17 = vadd.f32 %v459_v15, %v203_v14  ;;  %v460_v19 = vld [vmem:[%s1702_s29 + $0x30] sm:$0xff]  ;;  %v205_v20 = vld [vmem:[%s1695_s30 + $0x38] sm:$0xff]  ;;  %v206_v23 = vld [vmem:[%s1695_s30 + $0x40] sm:$0xff]  ;;  %p1460_p7 = pnand %p1459_p6, %p2540_p12  ;;  %s1462_s19 = sshll.u32 %s1530_s24, 4  ;;  %s1463_s19 = int_to_ptr.vmem [resolvable:$false] %s1462_s19 }
  0x55   : > { %969 = vst [vmem:[%s1717_s20 + $0x18] sm:$0xff] %v713_v12  ;;  %v716_v21 = vadd.f32 %v460_v19, %v204_v18  ;;  %v461_v22 = vld [vmem:[%s1702_s29 + $0x38] sm:$0xff]  ;;  %v462_v24 = vld [vmem:[%s1702_s29 + $0x40] sm:$0xff]  ;;  %970 = vst [vmem:[%s1717_s20 + $0x20] sm:$0xff] %v714_v16  ;;  %s1464_s25 = scalar_lea.vmem %s1463_s19, 65536  ;;  %p1465_p9 = scmp.lt.s32.totalorder %s2482_s14, %s1463_s19 }
  0x56   : > { %971 = vst [vmem:[%s1717_s20 + $0x28] sm:$0xff] %v715_v17  ;;  %v717_v25 = vadd.f32 %v461_v22, %v205_v20  ;;  %v718_v26 = vadd.f32 %v462_v24, %v206_v23  ;;  %v207_v27 = vld [vmem:[%s1695_s30 + $0x48] sm:$0xff]  ;;  %v208_v29 = vld [vmem:[%s1695_s30 + $0x50] sm:$0xff]  ;;  %v209_v32 = vld [vmem:[%s1695_s30 + $0x58] sm:$0xff]  ;;  %p1461_p8 = pneg %p1460_p7  ;;  %p1466_p1 = scmp.lt.s32.totalorder %s1464_s25, %s1458_s17 }
  0x57   : > { %v463_v28 = vld [vmem:[%s1702_s29 + $0x48] sm:$0xff]  ;;  %972 = vst [vmem:[%s1717_s20 + $0x30] sm:$0xff] %v716_v21  ;;  %v464_v31 = vld [vmem:[%s1702_s29 + $0x50] sm:$0xff]  ;;  %v465_v33 = vld [vmem:[%s1702_s29 + $0x58] sm:$0xff] }
  0x58   : > { %v719_v30 = vadd.f32 %v463_v28, %v207_v27  ;;  %973 = vst [vmem:[%s1717_s20 + $0x38] sm:$0xff] %v717_v25  ;;  %974 = vst [vmem:[%s1717_s20 + $0x40] sm:$0xff] %v718_v26  ;;  %v720_v34 = vadd.f32 %v464_v31, %v208_v29  ;;  %v721_v35 = vadd.f32 %v465_v33, %v209_v32  ;;  %v210_v36 = vld [vmem:[%s1695_s30 + $0x60] sm:$0xff]  ;;  %v211_v38 = vld [vmem:[%s1695_s30 + $0x68] sm:$0xff]  ;;  %p1467_p3 = por %p1466_p1, %p1465_p9 }
  0x59   : > { %v466_v37 = vld [vmem:[%s1702_s29 + $0x60] sm:$0xff]  ;;  %v467_v40 = vld [vmem:[%s1702_s29 + $0x68] sm:$0xff]  ;;  %v212_v41 = vld [vmem:[%s1695_s30 + $0x70] sm:$0xff] }
  0x5a   : > { %975 = vst [vmem:[%s1717_s20 + $0x48] sm:$0xff] %v719_v30  ;;  %v722_v39 = vadd.f32 %v466_v37, %v210_v36  ;;  %v468_v42 = vld [vmem:[%s1702_s29 + $0x70] sm:$0xff]  ;;  %976 = vst [vmem:[%s1717_s20 + $0x50] sm:$0xff] %v720_v34  ;;  %v723_v43 = vadd.f32 %v467_v40, %v211_v38  ;;  %v213_v45 = vld [vmem:[%s1695_s30 + $0x78] sm:$0xff]  ;;  %p1468_p5 = pnand %p1467_p3, %p1461_p8 }
  0x5b   : > { %977 = vst [vmem:[%s1717_s20 + $0x58] sm:$0xff] %v721_v35  ;;  %v724_v44 = vadd.f32 %v468_v42, %v212_v41  ;;  %v469_v46 = vld [vmem:[%s1702_s29 + $0x78] sm:$0xff]  ;;  %v214_v47 = vld [vmem:[%s1695_s30 + $0x80] sm:$0xff]  ;;  %v215_v50 = vld [vmem:[%s1695_s30 + $0x88] sm:$0xff] }
  0x5c   : > { %978 = vst [vmem:[%s1717_s20 + $0x60] sm:$0xff] %v722_v39  ;;  %v725_v48 = vadd.f32 %v469_v46, %v213_v45  ;;  %v470_v49 = vld [vmem:[%s1702_s29 + $0x80] sm:$0xff]  ;;  %v471_v51 = vld [vmem:[%s1702_s29 + $0x88] sm:$0xff]  ;;  %979 = vst [vmem:[%s1717_s20 + $0x68] sm:$0xff] %v723_v43 }
  0x5d   : > { %980 = vst [vmem:[%s1717_s20 + $0x70] sm:$0xff] %v724_v44  ;;  %v726_v52 = vadd.f32 %v470_v49, %v214_v47  ;;  %v727_v53 = vadd.f32 %v471_v51, %v215_v50  ;;  %v216_v54 = vld [vmem:[%s1695_s30 + $0x90] sm:$0xff]  ;;  %v217_v56 = vld [vmem:[%s1695_s30 + $0x98] sm:$0xff]  ;;  %v218_v59 = vld [vmem:[%s1695_s30 + $0xa0] sm:$0xff] }
  0x5e   : > { %v472_v55 = vld [vmem:[%s1702_s29 + $0x90] sm:$0xff]  ;;  %981 = vst [vmem:[%s1717_s20 + $0x78] sm:$0xff] %v725_v48  ;;  %v473_v58 = vld [vmem:[%s1702_s29 + $0x98] sm:$0xff]  ;;  %v474_v60 = vld [vmem:[%s1702_s29 + $0xa0] sm:$0xff] }
  0x5f   : > { %v728_v57 = vadd.f32 %v472_v55, %v216_v54  ;;  %982 = vst [vmem:[%s1717_s20 + $0x80] sm:$0xff] %v726_v52  ;;  %983 = vst [vmem:[%s1717_s20 + $0x88] sm:$0xff] %v727_v53  ;;  %v729_v61 = vadd.f32 %v473_v58, %v217_v56  ;;  %v730_v62 = vadd.f32 %v474_v60, %v218_v59  ;;  %v219_v63 = vld [vmem:[%s1695_s30 + $0xa8] sm:$0xff]  ;;  %v220_v1 = vld [vmem:[%s1695_s30 + $0xb0] sm:$0xff] }
  0x60   : > { %v475_v0 = vld [vmem:[%s1702_s29 + $0xa8] sm:$0xff]  ;;  %v476_v3 = vld [vmem:[%s1702_s29 + $0xb0] sm:$0xff]  ;;  %v221_v4 = vld [vmem:[%s1695_s30 + $0xb8] sm:$0xff] }
  0x61   : > { %984 = vst [vmem:[%s1717_s20 + $0x90] sm:$0xff] %v728_v57  ;;  %v731_v2 = vadd.f32 %v475_v0, %v219_v63  ;;  %v477_v5 = vld [vmem:[%s1702_s29 + $0xb8] sm:$0xff]  ;;  %985 = vst [vmem:[%s1717_s20 + $0x98] sm:$0xff] %v729_v61  ;;  %v732_v6 = vadd.f32 %v476_v3, %v220_v1  ;;  %v222_v8 = vld [vmem:[%s1695_s30 + $0xc0] sm:$0xff] }
  0x62   : > { %986 = vst [vmem:[%s1717_s20 + $0xa0] sm:$0xff] %v730_v62  ;;  %v733_v7 = vadd.f32 %v477_v5, %v221_v4  ;;  %v478_v9 = vld [vmem:[%s1702_s29 + $0xc0] sm:$0xff]  ;;  %v223_v10 = vld [vmem:[%s1695_s30 + $0xc8] sm:$0xff]  ;;  %v224_v13 = vld [vmem:[%s1695_s30 + $0xd0] sm:$0xff] }
  0x63   : > { %987 = vst [vmem:[%s1717_s20 + $0xa8] sm:$0xff] %v731_v2  ;;  %v734_v11 = vadd.f32 %v478_v9, %v222_v8  ;;  %v479_v12 = vld [vmem:[%s1702_s29 + $0xc8] sm:$0xff]  ;;  %v480_v14 = vld [vmem:[%s1702_s29 + $0xd0] sm:$0xff]  ;;  %988 = vst [vmem:[%s1717_s20 + $0xb0] sm:$0xff] %v732_v6 }
  0x64   : > { %989 = vst [vmem:[%s1717_s20 + $0xb8] sm:$0xff] %v733_v7  ;;  %v735_v15 = vadd.f32 %v479_v12, %v223_v10  ;;  %v736_v16 = vadd.f32 %v480_v14, %v224_v13  ;;  %v225_v17 = vld [vmem:[%s1695_s30 + $0xd8] sm:$0xff]  ;;  %v226_v19 = vld [vmem:[%s1695_s30 + $0xe0] sm:$0xff]  ;;  %v227_v22 = vld [vmem:[%s1695_s30 + $0xe8] sm:$0xff] }
  0x65   : > { %v481_v18 = vld [vmem:[%s1702_s29 + $0xd8] sm:$0xff]  ;;  %990 = vst [vmem:[%s1717_s20 + $0xc0] sm:$0xff] %v734_v11  ;;  %v482_v21 = vld [vmem:[%s1702_s29 + $0xe0] sm:$0xff]  ;;  %v483_v23 = vld [vmem:[%s1702_s29 + $0xe8] sm:$0xff] }
  0x66   : > { %v737_v20 = vadd.f32 %v481_v18, %v225_v17  ;;  %991 = vst [vmem:[%s1717_s20 + $0xc8] sm:$0xff] %v735_v15  ;;  %992 = vst [vmem:[%s1717_s20 + $0xd0] sm:$0xff] %v736_v16  ;;  %v738_v24 = vadd.f32 %v482_v21, %v226_v19  ;;  %v739_v25 = vadd.f32 %v483_v23, %v227_v22  ;;  %v228_v26 = vld [vmem:[%s1695_s30 + $0xf0] sm:$0xff]  ;;  %v229_v28 = vld [vmem:[%s1695_s30 + $0xf8] sm:$0xff] }
  0x67   : > { %v484_v27 = vld [vmem:[%s1702_s29 + $0xf0] sm:$0xff]  ;;  %v485_v30 = vld [vmem:[%s1702_s29 + $0xf8] sm:$0xff]  ;;  %v230_v31 = vld [vmem:[%s1695_s30 + $0x100] sm:$0xff] }
  0x68   : > { %993 = vst [vmem:[%s1717_s20 + $0xd8] sm:$0xff] %v737_v20  ;;  %v740_v29 = vadd.f32 %v484_v27, %v228_v26  ;;  %v486_v32 = vld [vmem:[%s1702_s29 + $0x100] sm:$0xff]  ;;  %994 = vst [vmem:[%s1717_s20 + $0xe0] sm:$0xff] %v738_v24  ;;  %v741_v33 = vadd.f32 %v485_v30, %v229_v28  ;;  %v231_v35 = vld [vmem:[%s1695_s30 + $0x108] sm:$0xff] }
  0x69   : > { %995 = vst [vmem:[%s1717_s20 + $0xe8] sm:$0xff] %v739_v25  ;;  %v742_v34 = vadd.f32 %v486_v32, %v230_v31  ;;  %v487_v36 = vld [vmem:[%s1702_s29 + $0x108] sm:$0xff]  ;;  %v232_v37 = vld [vmem:[%s1695_s30 + $0x110] sm:$0xff]  ;;  %v233_v40 = vld [vmem:[%s1695_s30 + $0x118] sm:$0xff] }
  0x6a   : > { %996 = vst [vmem:[%s1717_s20 + $0xf0] sm:$0xff] %v740_v29  ;;  %v743_v38 = vadd.f32 %v487_v36, %v231_v35  ;;  %v488_v39 = vld [vmem:[%s1702_s29 + $0x110] sm:$0xff]  ;;  %v489_v41 = vld [vmem:[%s1702_s29 + $0x118] sm:$0xff]  ;;  %997 = vst [vmem:[%s1717_s20 + $0xf8] sm:$0xff] %v741_v33 }
  0x6b   : > { %998 = vst [vmem:[%s1717_s20 + $0x100] sm:$0xff] %v742_v34  ;;  %v744_v42 = vadd.f32 %v488_v39, %v232_v37  ;;  %v745_v43 = vadd.f32 %v489_v41, %v233_v40  ;;  %v234_v44 = vld [vmem:[%s1695_s30 + $0x120] sm:$0xff]  ;;  %v235_v46 = vld [vmem:[%s1695_s30 + $0x128] sm:$0xff]  ;;  %v236_v49 = vld [vmem:[%s1695_s30 + $0x130] sm:$0xff] }
  0x6c   : > { %v490_v45 = vld [vmem:[%s1702_s29 + $0x120] sm:$0xff]  ;;  %999 = vst [vmem:[%s1717_s20 + $0x108] sm:$0xff] %v743_v38  ;;  %v491_v48 = vld [vmem:[%s1702_s29 + $0x128] sm:$0xff]  ;;  %v492_v50 = vld [vmem:[%s1702_s29 + $0x130] sm:$0xff] }
  0x6d   : > { %v746_v47 = vadd.f32 %v490_v45, %v234_v44  ;;  %1000 = vst [vmem:[%s1717_s20 + $0x110] sm:$0xff] %v744_v42  ;;  %1001 = vst [vmem:[%s1717_s20 + $0x118] sm:$0xff] %v745_v43  ;;  %v747_v51 = vadd.f32 %v491_v48, %v235_v46  ;;  %v748_v52 = vadd.f32 %v492_v50, %v236_v49  ;;  %v237_v53 = vld [vmem:[%s1695_s30 + $0x138] sm:$0xff]  ;;  %v238_v55 = vld [vmem:[%s1695_s30 + $0x140] sm:$0xff] }
  0x6e   : > { %v493_v54 = vld [vmem:[%s1702_s29 + $0x138] sm:$0xff]  ;;  %v494_v57 = vld [vmem:[%s1702_s29 + $0x140] sm:$0xff]  ;;  %v239_v58 = vld [vmem:[%s1695_s30 + $0x148] sm:$0xff] }
  0x6f   : > { %1002 = vst [vmem:[%s1717_s20 + $0x120] sm:$0xff] %v746_v47  ;;  %v749_v56 = vadd.f32 %v493_v54, %v237_v53  ;;  %v495_v59 = vld [vmem:[%s1702_s29 + $0x148] sm:$0xff]  ;;  %1003 = vst [vmem:[%s1717_s20 + $0x128] sm:$0xff] %v747_v51  ;;  %v750_v60 = vadd.f32 %v494_v57, %v238_v55  ;;  %v240_v62 = vld [vmem:[%s1695_s30 + $0x150] sm:$0xff] }
  0x70   : > { %1004 = vst [vmem:[%s1717_s20 + $0x130] sm:$0xff] %v748_v52  ;;  %v751_v61 = vadd.f32 %v495_v59, %v239_v58  ;;  %v496_v63 = vld [vmem:[%s1702_s29 + $0x150] sm:$0xff]  ;;  %v241_v0 = vld [vmem:[%s1695_s30 + $0x158] sm:$0xff]  ;;  %v242_v3 = vld [vmem:[%s1695_s30 + $0x160] sm:$0xff] }
  0x71   : > { %1005 = vst [vmem:[%s1717_s20 + $0x138] sm:$0xff] %v749_v56  ;;  %v752_v1 = vadd.f32 %v496_v63, %v240_v62  ;;  %v497_v2 = vld [vmem:[%s1702_s29 + $0x158] sm:$0xff]  ;;  %v498_v4 = vld [vmem:[%s1702_s29 + $0x160] sm:$0xff]  ;;  %1006 = vst [vmem:[%s1717_s20 + $0x140] sm:$0xff] %v750_v60 }
  0x72   : > { %1007 = vst [vmem:[%s1717_s20 + $0x148] sm:$0xff] %v751_v61  ;;  %v753_v5 = vadd.f32 %v497_v2, %v241_v0  ;;  %v754_v6 = vadd.f32 %v498_v4, %v242_v3  ;;  %v243_v7 = vld [vmem:[%s1695_s30 + $0x168] sm:$0xff]  ;;  %v244_v9 = vld [vmem:[%s1695_s30 + $0x170] sm:$0xff]  ;;  %v245_v12 = vld [vmem:[%s1695_s30 + $0x178] sm:$0xff] }
  0x73   : > { %v499_v8 = vld [vmem:[%s1702_s29 + $0x168] sm:$0xff]  ;;  %1008 = vst [vmem:[%s1717_s20 + $0x150] sm:$0xff] %v752_v1  ;;  %v500_v11 = vld [vmem:[%s1702_s29 + $0x170] sm:$0xff]  ;;  %v501_v13 = vld [vmem:[%s1702_s29 + $0x178] sm:$0xff] }
  0x74   : > { %v755_v10 = vadd.f32 %v499_v8, %v243_v7  ;;  %1009 = vst [vmem:[%s1717_s20 + $0x158] sm:$0xff] %v753_v5  ;;  %1010 = vst [vmem:[%s1717_s20 + $0x160] sm:$0xff] %v754_v6  ;;  %v756_v14 = vadd.f32 %v500_v11, %v244_v9  ;;  %v757_v15 = vadd.f32 %v501_v13, %v245_v12  ;;  %v246_v16 = vld [vmem:[%s1695_s30 + $0x180] sm:$0xff]  ;;  %v247_v18 = vld [vmem:[%s1695_s30 + $0x188] sm:$0xff] }
  0x75   : > { %v502_v17 = vld [vmem:[%s1702_s29 + $0x180] sm:$0xff]  ;;  %v503_v20 = vld [vmem:[%s1702_s29 + $0x188] sm:$0xff]  ;;  %v248_v21 = vld [vmem:[%s1695_s30 + $0x190] sm:$0xff] }
  0x76   : > { %1011 = vst [vmem:[%s1717_s20 + $0x168] sm:$0xff] %v755_v10  ;;  %v758_v19 = vadd.f32 %v502_v17, %v246_v16  ;;  %v504_v22 = vld [vmem:[%s1702_s29 + $0x190] sm:$0xff]  ;;  %1012 = vst [vmem:[%s1717_s20 + $0x170] sm:$0xff] %v756_v14  ;;  %v759_v23 = vadd.f32 %v503_v20, %v247_v18  ;;  %v249_v25 = vld [vmem:[%s1695_s30 + $0x198] sm:$0xff] }
  0x77   : > { %1013 = vst [vmem:[%s1717_s20 + $0x178] sm:$0xff] %v757_v15  ;;  %v760_v24 = vadd.f32 %v504_v22, %v248_v21  ;;  %v505_v26 = vld [vmem:[%s1702_s29 + $0x198] sm:$0xff]  ;;  %v250_v27 = vld [vmem:[%s1695_s30 + $0x1a0] sm:$0xff]  ;;  %v251_v30 = vld [vmem:[%s1695_s30 + $0x1a8] sm:$0xff] }
  0x78   : > { %1014 = vst [vmem:[%s1717_s20 + $0x180] sm:$0xff] %v758_v19  ;;  %v761_v28 = vadd.f32 %v505_v26, %v249_v25  ;;  %v506_v29 = vld [vmem:[%s1702_s29 + $0x1a0] sm:$0xff]  ;;  %v507_v31 = vld [vmem:[%s1702_s29 + $0x1a8] sm:$0xff]  ;;  %1015 = vst [vmem:[%s1717_s20 + $0x188] sm:$0xff] %v759_v23 }
  0x79   : > { %1016 = vst [vmem:[%s1717_s20 + $0x190] sm:$0xff] %v760_v24  ;;  %v762_v32 = vadd.f32 %v506_v29, %v250_v27  ;;  %v763_v33 = vadd.f32 %v507_v31, %v251_v30  ;;  %v252_v34 = vld [vmem:[%s1695_s30 + $0x1b0] sm:$0xff]  ;;  %v253_v36 = vld [vmem:[%s1695_s30 + $0x1b8] sm:$0xff]  ;;  %v254_v39 = vld [vmem:[%s1695_s30 + $0x1c0] sm:$0xff] }
  0x7a   : > { %v508_v35 = vld [vmem:[%s1702_s29 + $0x1b0] sm:$0xff]  ;;  %1017 = vst [vmem:[%s1717_s20 + $0x198] sm:$0xff] %v761_v28  ;;  %v509_v38 = vld [vmem:[%s1702_s29 + $0x1b8] sm:$0xff]  ;;  %v510_v40 = vld [vmem:[%s1702_s29 + $0x1c0] sm:$0xff] }
  0x7b   : > { %v764_v37 = vadd.f32 %v508_v35, %v252_v34  ;;  %1018 = vst [vmem:[%s1717_s20 + $0x1a0] sm:$0xff] %v762_v32  ;;  %1019 = vst [vmem:[%s1717_s20 + $0x1a8] sm:$0xff] %v763_v33  ;;  %v765_v41 = vadd.f32 %v509_v38, %v253_v36  ;;  %v766_v42 = vadd.f32 %v510_v40, %v254_v39  ;;  %v255_v43 = vld [vmem:[%s1695_s30 + $0x1c8] sm:$0xff]  ;;  %v256_v45 = vld [vmem:[%s1695_s30 + $0x1d0] sm:$0xff] }
  0x7c   : > { %v511_v44 = vld [vmem:[%s1702_s29 + $0x1c8] sm:$0xff]  ;;  %v512_v47 = vld [vmem:[%s1702_s29 + $0x1d0] sm:$0xff]  ;;  %v257_v48 = vld [vmem:[%s1695_s30 + $0x1d8] sm:$0xff] }
  0x7d   : > { %1020 = vst [vmem:[%s1717_s20 + $0x1b0] sm:$0xff] %v764_v37  ;;  %v767_v46 = vadd.f32 %v511_v44, %v255_v43  ;;  %v513_v49 = vld [vmem:[%s1702_s29 + $0x1d8] sm:$0xff]  ;;  %1021 = vst [vmem:[%s1717_s20 + $0x1b8] sm:$0xff] %v765_v41  ;;  %v768_v50 = vadd.f32 %v512_v47, %v256_v45  ;;  %v258_v52 = vld [vmem:[%s1695_s30 + $0x1e0] sm:$0xff] }
  0x7e   : > { %1022 = vst [vmem:[%s1717_s20 + $0x1c0] sm:$0xff] %v766_v42  ;;  %v769_v51 = vadd.f32 %v513_v49, %v257_v48  ;;  %v514_v53 = vld [vmem:[%s1702_s29 + $0x1e0] sm:$0xff]  ;;  %v259_v54 = vld [vmem:[%s1695_s30 + $0x1e8] sm:$0xff]  ;;  %v260_v57 = vld [vmem:[%s1695_s30 + $0x1f0] sm:$0xff] }
  0x7f   : > { %1023 = vst [vmem:[%s1717_s20 + $0x1c8] sm:$0xff] %v767_v46  ;;  %v770_v55 = vadd.f32 %v514_v53, %v258_v52  ;;  %v515_v56 = vld [vmem:[%s1702_s29 + $0x1e8] sm:$0xff]  ;;  %v516_v58 = vld [vmem:[%s1702_s29 + $0x1f0] sm:$0xff]  ;;  %1024 = vst [vmem:[%s1717_s20 + $0x1d0] sm:$0xff] %v768_v50 }
  0x80   : > { %1025 = vst [vmem:[%s1717_s20 + $0x1d8] sm:$0xff] %v769_v51  ;;  %v771_v59 = vadd.f32 %v515_v56, %v259_v54  ;;  %v772_v60 = vadd.f32 %v516_v58, %v260_v57  ;;  %v261_v61 = vld [vmem:[%s1695_s30 + $0x1f8] sm:$0xff]  ;;  %v262_v63 = vld [vmem:[%s1695_s30 + $0x200] sm:$0xff]  ;;  %v263_v2 = vld [vmem:[%s1695_s30 + $0x208] sm:$0xff] }
  0x81   : > { %v517_v62 = vld [vmem:[%s1702_s29 + $0x1f8] sm:$0xff]  ;;  %1026 = vst [vmem:[%s1717_s20 + $0x1e0] sm:$0xff] %v770_v55  ;;  %v518_v1 = vld [vmem:[%s1702_s29 + $0x200] sm:$0xff]  ;;  %v519_v3 = vld [vmem:[%s1702_s29 + $0x208] sm:$0xff] }
  0x82   : > { %v773_v0 = vadd.f32 %v517_v62, %v261_v61  ;;  %1027 = vst [vmem:[%s1717_s20 + $0x1e8] sm:$0xff] %v771_v59  ;;  %1028 = vst [vmem:[%s1717_s20 + $0x1f0] sm:$0xff] %v772_v60  ;;  %v774_v4 = vadd.f32 %v518_v1, %v262_v63  ;;  %v775_v5 = vadd.f32 %v519_v3, %v263_v2  ;;  %v264_v6 = vld [vmem:[%s1695_s30 + $0x210] sm:$0xff]  ;;  %v265_v8 = vld [vmem:[%s1695_s30 + $0x218] sm:$0xff] }
  0x83   : > { %v520_v7 = vld [vmem:[%s1702_s29 + $0x210] sm:$0xff]  ;;  %v521_v10 = vld [vmem:[%s1702_s29 + $0x218] sm:$0xff]  ;;  %v266_v11 = vld [vmem:[%s1695_s30 + $0x220] sm:$0xff] }
  0x84   : > { %1029 = vst [vmem:[%s1717_s20 + $0x1f8] sm:$0xff] %v773_v0  ;;  %v776_v9 = vadd.f32 %v520_v7, %v264_v6  ;;  %v522_v12 = vld [vmem:[%s1702_s29 + $0x220] sm:$0xff]  ;;  %1030 = vst [vmem:[%s1717_s20 + $0x200] sm:$0xff] %v774_v4  ;;  %v777_v13 = vadd.f32 %v521_v10, %v265_v8  ;;  %v267_v15 = vld [vmem:[%s1695_s30 + $0x228] sm:$0xff] }
  0x85   : > { %1031 = vst [vmem:[%s1717_s20 + $0x208] sm:$0xff] %v775_v5  ;;  %v778_v14 = vadd.f32 %v522_v12, %v266_v11  ;;  %v523_v16 = vld [vmem:[%s1702_s29 + $0x228] sm:$0xff]  ;;  %v268_v17 = vld [vmem:[%s1695_s30 + $0x230] sm:$0xff]  ;;  %v269_v20 = vld [vmem:[%s1695_s30 + $0x238] sm:$0xff] }
  0x86   : > { %1032 = vst [vmem:[%s1717_s20 + $0x210] sm:$0xff] %v776_v9  ;;  %v779_v18 = vadd.f32 %v523_v16, %v267_v15  ;;  %v524_v19 = vld [vmem:[%s1702_s29 + $0x230] sm:$0xff]  ;;  %v525_v21 = vld [vmem:[%s1702_s29 + $0x238] sm:$0xff]  ;;  %1033 = vst [vmem:[%s1717_s20 + $0x218] sm:$0xff] %v777_v13 }
  0x87   : > { %1034 = vst [vmem:[%s1717_s20 + $0x220] sm:$0xff] %v778_v14  ;;  %v780_v22 = vadd.f32 %v524_v19, %v268_v17  ;;  %v781_v23 = vadd.f32 %v525_v21, %v269_v20  ;;  %v270_v24 = vld [vmem:[%s1695_s30 + $0x240] sm:$0xff]  ;;  %v271_v26 = vld [vmem:[%s1695_s30 + $0x248] sm:$0xff]  ;;  %v272_v29 = vld [vmem:[%s1695_s30 + $0x250] sm:$0xff] }
  0x88   : > { %v526_v25 = vld [vmem:[%s1702_s29 + $0x240] sm:$0xff]  ;;  %1035 = vst [vmem:[%s1717_s20 + $0x228] sm:$0xff] %v779_v18  ;;  %v527_v28 = vld [vmem:[%s1702_s29 + $0x248] sm:$0xff]  ;;  %v528_v30 = vld [vmem:[%s1702_s29 + $0x250] sm:$0xff] }
  0x89   : > { %v782_v27 = vadd.f32 %v526_v25, %v270_v24  ;;  %1036 = vst [vmem:[%s1717_s20 + $0x230] sm:$0xff] %v780_v22  ;;  %1037 = vst [vmem:[%s1717_s20 + $0x238] sm:$0xff] %v781_v23  ;;  %v783_v31 = vadd.f32 %v527_v28, %v271_v26  ;;  %v784_v32 = vadd.f32 %v528_v30, %v272_v29  ;;  %v273_v33 = vld [vmem:[%s1695_s30 + $0x258] sm:$0xff]  ;;  %v274_v35 = vld [vmem:[%s1695_s30 + $0x260] sm:$0xff] }
  0x8a   : > { %v529_v34 = vld [vmem:[%s1702_s29 + $0x258] sm:$0xff]  ;;  %v530_v37 = vld [vmem:[%s1702_s29 + $0x260] sm:$0xff]  ;;  %v275_v38 = vld [vmem:[%s1695_s30 + $0x268] sm:$0xff] }
  0x8b   : > { %1038 = vst [vmem:[%s1717_s20 + $0x240] sm:$0xff] %v782_v27  ;;  %v785_v36 = vadd.f32 %v529_v34, %v273_v33  ;;  %v531_v39 = vld [vmem:[%s1702_s29 + $0x268] sm:$0xff]  ;;  %1039 = vst [vmem:[%s1717_s20 + $0x248] sm:$0xff] %v783_v31  ;;  %v786_v40 = vadd.f32 %v530_v37, %v274_v35  ;;  %v276_v42 = vld [vmem:[%s1695_s30 + $0x270] sm:$0xff] }
  0x8c   : > { %1040 = vst [vmem:[%s1717_s20 + $0x250] sm:$0xff] %v784_v32  ;;  %v787_v41 = vadd.f32 %v531_v39, %v275_v38  ;;  %v532_v43 = vld [vmem:[%s1702_s29 + $0x270] sm:$0xff]  ;;  %v277_v44 = vld [vmem:[%s1695_s30 + $0x278] sm:$0xff]  ;;  %v278_v47 = vld [vmem:[%s1695_s30 + $0x280] sm:$0xff] }
  0x8d   : > { %1041 = vst [vmem:[%s1717_s20 + $0x258] sm:$0xff] %v785_v36  ;;  %v788_v45 = vadd.f32 %v532_v43, %v276_v42  ;;  %v533_v46 = vld [vmem:[%s1702_s29 + $0x278] sm:$0xff]  ;;  %v534_v48 = vld [vmem:[%s1702_s29 + $0x280] sm:$0xff]  ;;  %1042 = vst [vmem:[%s1717_s20 + $0x260] sm:$0xff] %v786_v40 }
  0x8e   : > { %1043 = vst [vmem:[%s1717_s20 + $0x268] sm:$0xff] %v787_v41  ;;  %v789_v49 = vadd.f32 %v533_v46, %v277_v44  ;;  %v790_v50 = vadd.f32 %v534_v48, %v278_v47  ;;  %v279_v51 = vld [vmem:[%s1695_s30 + $0x288] sm:$0xff]  ;;  %v280_v53 = vld [vmem:[%s1695_s30 + $0x290] sm:$0xff]  ;;  %v281_v56 = vld [vmem:[%s1695_s30 + $0x298] sm:$0xff] }
  0x8f   : > { %v535_v52 = vld [vmem:[%s1702_s29 + $0x288] sm:$0xff]  ;;  %1044 = vst [vmem:[%s1717_s20 + $0x270] sm:$0xff] %v788_v45  ;;  %v536_v55 = vld [vmem:[%s1702_s29 + $0x290] sm:$0xff]  ;;  %v537_v57 = vld [vmem:[%s1702_s29 + $0x298] sm:$0xff] }
  0x90   : > { %v791_v54 = vadd.f32 %v535_v52, %v279_v51  ;;  %1045 = vst [vmem:[%s1717_s20 + $0x278] sm:$0xff] %v789_v49  ;;  %1046 = vst [vmem:[%s1717_s20 + $0x280] sm:$0xff] %v790_v50  ;;  %v792_v58 = vadd.f32 %v536_v55, %v280_v53  ;;  %v793_v59 = vadd.f32 %v537_v57, %v281_v56  ;;  %v282_v60 = vld [vmem:[%s1695_s30 + $0x2a0] sm:$0xff]  ;;  %v283_v62 = vld [vmem:[%s1695_s30 + $0x2a8] sm:$0xff] }
  0x91   : > { %v538_v61 = vld [vmem:[%s1702_s29 + $0x2a0] sm:$0xff]  ;;  %v539_v0 = vld [vmem:[%s1702_s29 + $0x2a8] sm:$0xff]  ;;  %v284_v1 = vld [vmem:[%s1695_s30 + $0x2b0] sm:$0xff] }
  0x92   : > { %1047 = vst [vmem:[%s1717_s20 + $0x288] sm:$0xff] %v791_v54  ;;  %v794_v63 = vadd.f32 %v538_v61, %v282_v60  ;;  %v540_v2 = vld [vmem:[%s1702_s29 + $0x2b0] sm:$0xff]  ;;  %1048 = vst [vmem:[%s1717_s20 + $0x290] sm:$0xff] %v792_v58  ;;  %v795_v3 = vadd.f32 %v539_v0, %v283_v62  ;;  %v285_v5 = vld [vmem:[%s1695_s30 + $0x2b8] sm:$0xff] }
  0x93   : > { %1049 = vst [vmem:[%s1717_s20 + $0x298] sm:$0xff] %v793_v59  ;;  %v796_v4 = vadd.f32 %v540_v2, %v284_v1  ;;  %v541_v6 = vld [vmem:[%s1702_s29 + $0x2b8] sm:$0xff]  ;;  %v286_v7 = vld [vmem:[%s1695_s30 + $0x2c0] sm:$0xff]  ;;  %v287_v10 = vld [vmem:[%s1695_s30 + $0x2c8] sm:$0xff] }
  0x94   : > { %1050 = vst [vmem:[%s1717_s20 + $0x2a0] sm:$0xff] %v794_v63  ;;  %v797_v8 = vadd.f32 %v541_v6, %v285_v5  ;;  %v542_v9 = vld [vmem:[%s1702_s29 + $0x2c0] sm:$0xff]  ;;  %v543_v11 = vld [vmem:[%s1702_s29 + $0x2c8] sm:$0xff]  ;;  %1051 = vst [vmem:[%s1717_s20 + $0x2a8] sm:$0xff] %v795_v3 }
  0x95   : > { %1052 = vst [vmem:[%s1717_s20 + $0x2b0] sm:$0xff] %v796_v4  ;;  %v798_v12 = vadd.f32 %v542_v9, %v286_v7  ;;  %v799_v13 = vadd.f32 %v543_v11, %v287_v10  ;;  %v288_v14 = vld [vmem:[%s1695_s30 + $0x2d0] sm:$0xff]  ;;  %v289_v16 = vld [vmem:[%s1695_s30 + $0x2d8] sm:$0xff]  ;;  %v290_v19 = vld [vmem:[%s1695_s30 + $0x2e0] sm:$0xff] }
  0x96   : > { %v544_v15 = vld [vmem:[%s1702_s29 + $0x2d0] sm:$0xff]  ;;  %1053 = vst [vmem:[%s1717_s20 + $0x2b8] sm:$0xff] %v797_v8  ;;  %v545_v18 = vld [vmem:[%s1702_s29 + $0x2d8] sm:$0xff]  ;;  %v546_v20 = vld [vmem:[%s1702_s29 + $0x2e0] sm:$0xff] }
  0x97   : > { %v800_v17 = vadd.f32 %v544_v15, %v288_v14  ;;  %1054 = vst [vmem:[%s1717_s20 + $0x2c0] sm:$0xff] %v798_v12  ;;  %1055 = vst [vmem:[%s1717_s20 + $0x2c8] sm:$0xff] %v799_v13  ;;  %v801_v21 = vadd.f32 %v545_v18, %v289_v16  ;;  %v802_v22 = vadd.f32 %v546_v20, %v290_v19  ;;  %v291_v23 = vld [vmem:[%s1695_s30 + $0x2e8] sm:$0xff]  ;;  %v292_v25 = vld [vmem:[%s1695_s30 + $0x2f0] sm:$0xff] }
  0x98   : > { %v547_v24 = vld [vmem:[%s1702_s29 + $0x2e8] sm:$0xff]  ;;  %v548_v27 = vld [vmem:[%s1702_s29 + $0x2f0] sm:$0xff]  ;;  %v293_v28 = vld [vmem:[%s1695_s30 + $0x2f8] sm:$0xff] }
  0x99   : > { %1056 = vst [vmem:[%s1717_s20 + $0x2d0] sm:$0xff] %v800_v17  ;;  %v803_v26 = vadd.f32 %v547_v24, %v291_v23  ;;  %v549_v29 = vld [vmem:[%s1702_s29 + $0x2f8] sm:$0xff]  ;;  %1057 = vst [vmem:[%s1717_s20 + $0x2d8] sm:$0xff] %v801_v21  ;;  %v804_v30 = vadd.f32 %v548_v27, %v292_v25  ;;  %v294_v32 = vld [vmem:[%s1695_s30 + $0x300] sm:$0xff] }
  0x9a   : > { %1058 = vst [vmem:[%s1717_s20 + $0x2e0] sm:$0xff] %v802_v22  ;;  %v805_v31 = vadd.f32 %v549_v29, %v293_v28  ;;  %v550_v33 = vld [vmem:[%s1702_s29 + $0x300] sm:$0xff]  ;;  %v295_v34 = vld [vmem:[%s1695_s30 + $0x308] sm:$0xff]  ;;  %v296_v37 = vld [vmem:[%s1695_s30 + $0x310] sm:$0xff] }
  0x9b   : > { %1059 = vst [vmem:[%s1717_s20 + $0x2e8] sm:$0xff] %v803_v26  ;;  %v806_v35 = vadd.f32 %v550_v33, %v294_v32  ;;  %v551_v36 = vld [vmem:[%s1702_s29 + $0x308] sm:$0xff]  ;;  %v552_v38 = vld [vmem:[%s1702_s29 + $0x310] sm:$0xff]  ;;  %1060 = vst [vmem:[%s1717_s20 + $0x2f0] sm:$0xff] %v804_v30 }
  0x9c   : > { %1061 = vst [vmem:[%s1717_s20 + $0x2f8] sm:$0xff] %v805_v31  ;;  %v807_v39 = vadd.f32 %v551_v36, %v295_v34  ;;  %v808_v40 = vadd.f32 %v552_v38, %v296_v37  ;;  %v297_v41 = vld [vmem:[%s1695_s30 + $0x318] sm:$0xff]  ;;  %v298_v43 = vld [vmem:[%s1695_s30 + $0x320] sm:$0xff]  ;;  %v299_v46 = vld [vmem:[%s1695_s30 + $0x328] sm:$0xff] }
  0x9d   : > { %v553_v42 = vld [vmem:[%s1702_s29 + $0x318] sm:$0xff]  ;;  %1062 = vst [vmem:[%s1717_s20 + $0x300] sm:$0xff] %v806_v35  ;;  %v554_v45 = vld [vmem:[%s1702_s29 + $0x320] sm:$0xff]  ;;  %v555_v47 = vld [vmem:[%s1702_s29 + $0x328] sm:$0xff] }
  0x9e   : > { %v809_v44 = vadd.f32 %v553_v42, %v297_v41  ;;  %1063 = vst [vmem:[%s1717_s20 + $0x308] sm:$0xff] %v807_v39  ;;  %1064 = vst [vmem:[%s1717_s20 + $0x310] sm:$0xff] %v808_v40  ;;  %v810_v48 = vadd.f32 %v554_v45, %v298_v43  ;;  %v811_v49 = vadd.f32 %v555_v47, %v299_v46  ;;  %v300_v50 = vld [vmem:[%s1695_s30 + $0x330] sm:$0xff]  ;;  %v301_v52 = vld [vmem:[%s1695_s30 + $0x338] sm:$0xff] }
  0x9f   : > { %v556_v51 = vld [vmem:[%s1702_s29 + $0x330] sm:$0xff]  ;;  %v557_v54 = vld [vmem:[%s1702_s29 + $0x338] sm:$0xff]  ;;  %v302_v55 = vld [vmem:[%s1695_s30 + $0x340] sm:$0xff] }
  0xa0   : > { %1065 = vst [vmem:[%s1717_s20 + $0x318] sm:$0xff] %v809_v44  ;;  %v812_v53 = vadd.f32 %v556_v51, %v300_v50  ;;  %v558_v56 = vld [vmem:[%s1702_s29 + $0x340] sm:$0xff]  ;;  %1066 = vst [vmem:[%s1717_s20 + $0x320] sm:$0xff] %v810_v48  ;;  %v813_v57 = vadd.f32 %v557_v54, %v301_v52  ;;  %v303_v59 = vld [vmem:[%s1695_s30 + $0x348] sm:$0xff] }
  0xa1   : > { %1067 = vst [vmem:[%s1717_s20 + $0x328] sm:$0xff] %v811_v49  ;;  %v814_v58 = vadd.f32 %v558_v56, %v302_v55  ;;  %v559_v60 = vld [vmem:[%s1702_s29 + $0x348] sm:$0xff]  ;;  %v304_v61 = vld [vmem:[%s1695_s30 + $0x350] sm:$0xff]  ;;  %v305_v0 = vld [vmem:[%s1695_s30 + $0x358] sm:$0xff] }
  0xa2   : > { %1068 = vst [vmem:[%s1717_s20 + $0x330] sm:$0xff] %v812_v53  ;;  %v815_v62 = vadd.f32 %v559_v60, %v303_v59  ;;  %v560_v63 = vld [vmem:[%s1702_s29 + $0x350] sm:$0xff]  ;;  %v561_v1 = vld [vmem:[%s1702_s29 + $0x358] sm:$0xff]  ;;  %1069 = vst [vmem:[%s1717_s20 + $0x338] sm:$0xff] %v813_v57 }
  0xa3   : > { %1070 = vst [vmem:[%s1717_s20 + $0x340] sm:$0xff] %v814_v58  ;;  %v816_v2 = vadd.f32 %v560_v63, %v304_v61  ;;  %v817_v3 = vadd.f32 %v561_v1, %v305_v0  ;;  %v306_v4 = vld [vmem:[%s1695_s30 + $0x360] sm:$0xff]  ;;  %v307_v6 = vld [vmem:[%s1695_s30 + $0x368] sm:$0xff]  ;;  %v308_v9 = vld [vmem:[%s1695_s30 + $0x370] sm:$0xff] }
  0xa4   : > { %v562_v5 = vld [vmem:[%s1702_s29 + $0x360] sm:$0xff]  ;;  %1071 = vst [vmem:[%s1717_s20 + $0x348] sm:$0xff] %v815_v62  ;;  %v563_v8 = vld [vmem:[%s1702_s29 + $0x368] sm:$0xff]  ;;  %v564_v10 = vld [vmem:[%s1702_s29 + $0x370] sm:$0xff] }
  0xa5   : > { %v818_v7 = vadd.f32 %v562_v5, %v306_v4  ;;  %1072 = vst [vmem:[%s1717_s20 + $0x350] sm:$0xff] %v816_v2  ;;  %1073 = vst [vmem:[%s1717_s20 + $0x358] sm:$0xff] %v817_v3  ;;  %v819_v11 = vadd.f32 %v563_v8, %v307_v6  ;;  %v820_v12 = vadd.f32 %v564_v10, %v308_v9  ;;  %v309_v13 = vld [vmem:[%s1695_s30 + $0x378] sm:$0xff]  ;;  %v310_v15 = vld [vmem:[%s1695_s30 + $0x380] sm:$0xff] }
  0xa6   : > { %v565_v14 = vld [vmem:[%s1702_s29 + $0x378] sm:$0xff]  ;;  %v566_v17 = vld [vmem:[%s1702_s29 + $0x380] sm:$0xff]  ;;  %v311_v18 = vld [vmem:[%s1695_s30 + $0x388] sm:$0xff] }
  0xa7   : > { %1074 = vst [vmem:[%s1717_s20 + $0x360] sm:$0xff] %v818_v7  ;;  %v821_v16 = vadd.f32 %v565_v14, %v309_v13  ;;  %v567_v19 = vld [vmem:[%s1702_s29 + $0x388] sm:$0xff]  ;;  %1075 = vst [vmem:[%s1717_s20 + $0x368] sm:$0xff] %v819_v11  ;;  %v822_v20 = vadd.f32 %v566_v17, %v310_v15  ;;  %v312_v22 = vld [vmem:[%s1695_s30 + $0x390] sm:$0xff] }
  0xa8   : > { %1076 = vst [vmem:[%s1717_s20 + $0x370] sm:$0xff] %v820_v12  ;;  %v823_v21 = vadd.f32 %v567_v19, %v311_v18  ;;  %v568_v23 = vld [vmem:[%s1702_s29 + $0x390] sm:$0xff]  ;;  %v313_v24 = vld [vmem:[%s1695_s30 + $0x398] sm:$0xff]  ;;  %v314_v27 = vld [vmem:[%s1695_s30 + $0x3a0] sm:$0xff] }
  0xa9   : > { %1077 = vst [vmem:[%s1717_s20 + $0x378] sm:$0xff] %v821_v16  ;;  %v824_v25 = vadd.f32 %v568_v23, %v312_v22  ;;  %v569_v26 = vld [vmem:[%s1702_s29 + $0x398] sm:$0xff]  ;;  %v570_v28 = vld [vmem:[%s1702_s29 + $0x3a0] sm:$0xff]  ;;  %1078 = vst [vmem:[%s1717_s20 + $0x380] sm:$0xff] %v822_v20 }
  0xaa   : > { %1079 = vst [vmem:[%s1717_s20 + $0x388] sm:$0xff] %v823_v21  ;;  %v825_v29 = vadd.f32 %v569_v26, %v313_v24  ;;  %v826_v30 = vadd.f32 %v570_v28, %v314_v27  ;;  %v315_v31 = vld [vmem:[%s1695_s30 + $0x3a8] sm:$0xff]  ;;  %v316_v33 = vld [vmem:[%s1695_s30 + $0x3b0] sm:$0xff]  ;;  %v317_v36 = vld [vmem:[%s1695_s30 + $0x3b8] sm:$0xff] }
  0xab   : > { %v571_v32 = vld [vmem:[%s1702_s29 + $0x3a8] sm:$0xff]  ;;  %1080 = vst [vmem:[%s1717_s20 + $0x390] sm:$0xff] %v824_v25  ;;  %v572_v35 = vld [vmem:[%s1702_s29 + $0x3b0] sm:$0xff]  ;;  %v573_v37 = vld [vmem:[%s1702_s29 + $0x3b8] sm:$0xff] }
  0xac   : > { %v827_v34 = vadd.f32 %v571_v32, %v315_v31  ;;  %1081 = vst [vmem:[%s1717_s20 + $0x398] sm:$0xff] %v825_v29  ;;  %1082 = vst [vmem:[%s1717_s20 + $0x3a0] sm:$0xff] %v826_v30  ;;  %v828_v38 = vadd.f32 %v572_v35, %v316_v33  ;;  %v829_v39 = vadd.f32 %v573_v37, %v317_v36  ;;  %v318_v40 = vld [vmem:[%s1695_s30 + $0x3c0] sm:$0xff]  ;;  %v319_v42 = vld [vmem:[%s1695_s30 + $0x3c8] sm:$0xff] }
  0xad   : > { %v574_v41 = vld [vmem:[%s1702_s29 + $0x3c0] sm:$0xff]  ;;  %v575_v44 = vld [vmem:[%s1702_s29 + $0x3c8] sm:$0xff]  ;;  %v320_v45 = vld [vmem:[%s1695_s30 + $0x3d0] sm:$0xff] }
  0xae   : > { %1083 = vst [vmem:[%s1717_s20 + $0x3a8] sm:$0xff] %v827_v34  ;;  %v830_v43 = vadd.f32 %v574_v41, %v318_v40  ;;  %v576_v46 = vld [vmem:[%s1702_s29 + $0x3d0] sm:$0xff]  ;;  %1084 = vst [vmem:[%s1717_s20 + $0x3b0] sm:$0xff] %v828_v38  ;;  %v831_v47 = vadd.f32 %v575_v44, %v319_v42  ;;  %v321_v49 = vld [vmem:[%s1695_s30 + $0x3d8] sm:$0xff] }
  0xaf   : > { %1085 = vst [vmem:[%s1717_s20 + $0x3b8] sm:$0xff] %v829_v39  ;;  %v832_v48 = vadd.f32 %v576_v46, %v320_v45  ;;  %v577_v50 = vld [vmem:[%s1702_s29 + $0x3d8] sm:$0xff]  ;;  %v322_v51 = vld [vmem:[%s1695_s30 + $0x3e0] sm:$0xff]  ;;  %v323_v54 = vld [vmem:[%s1695_s30 + $0x3e8] sm:$0xff] }
  0xb0   : > { %1086 = vst [vmem:[%s1717_s20 + $0x3c0] sm:$0xff] %v830_v43  ;;  %v833_v52 = vadd.f32 %v577_v50, %v321_v49  ;;  %v578_v53 = vld [vmem:[%s1702_s29 + $0x3e0] sm:$0xff]  ;;  %v579_v55 = vld [vmem:[%s1702_s29 + $0x3e8] sm:$0xff]  ;;  %1087 = vst [vmem:[%s1717_s20 + $0x3c8] sm:$0xff] %v831_v47 }
  0xb1   : > { %1088 = vst [vmem:[%s1717_s20 + $0x3d0] sm:$0xff] %v832_v48  ;;  %v834_v56 = vadd.f32 %v578_v53, %v322_v51  ;;  %v835_v57 = vadd.f32 %v579_v55, %v323_v54  ;;  %v324_v58 = vld [vmem:[%s1695_s30 + $0x3f0] sm:$0xff]  ;;  %v325_v60 = vld [vmem:[%s1695_s30 + $0x3f8] sm:$0xff]  ;;  %v326_v63 = vld [vmem:[%s1695_s30 + $0x400] sm:$0xff] }
  0xb2   : > { %v580_v59 = vld [vmem:[%s1702_s29 + $0x3f0] sm:$0xff]  ;;  %1089 = vst [vmem:[%s1717_s20 + $0x3d8] sm:$0xff] %v833_v52  ;;  %v581_v62 = vld [vmem:[%s1702_s29 + $0x3f8] sm:$0xff]  ;;  %v582_v0 = vld [vmem:[%s1702_s29 + $0x400] sm:$0xff] }
  0xb3   : > { %v836_v61 = vadd.f32 %v580_v59, %v324_v58  ;;  %1090 = vst [vmem:[%s1717_s20 + $0x3e0] sm:$0xff] %v834_v56  ;;  %1091 = vst [vmem:[%s1717_s20 + $0x3e8] sm:$0xff] %v835_v57  ;;  %v837_v1 = vadd.f32 %v581_v62, %v325_v60  ;;  %v838_v2 = vadd.f32 %v582_v0, %v326_v63  ;;  %v327_v3 = vld [vmem:[%s1695_s30 + $0x408] sm:$0xff]  ;;  %v328_v5 = vld [vmem:[%s1695_s30 + $0x410] sm:$0xff] }
  0xb4   : > { %v583_v4 = vld [vmem:[%s1702_s29 + $0x408] sm:$0xff]  ;;  %v584_v7 = vld [vmem:[%s1702_s29 + $0x410] sm:$0xff]  ;;  %v329_v8 = vld [vmem:[%s1695_s30 + $0x418] sm:$0xff] }
  0xb5   : > { %1092 = vst [vmem:[%s1717_s20 + $0x3f0] sm:$0xff] %v836_v61  ;;  %v839_v6 = vadd.f32 %v583_v4, %v327_v3  ;;  %v585_v9 = vld [vmem:[%s1702_s29 + $0x418] sm:$0xff]  ;;  %1093 = vst [vmem:[%s1717_s20 + $0x3f8] sm:$0xff] %v837_v1  ;;  %v840_v10 = vadd.f32 %v584_v7, %v328_v5  ;;  %v330_v12 = vld [vmem:[%s1695_s30 + $0x420] sm:$0xff] }
  0xb6   : > { %1094 = vst [vmem:[%s1717_s20 + $0x400] sm:$0xff] %v838_v2  ;;  %v841_v11 = vadd.f32 %v585_v9, %v329_v8  ;;  %v586_v13 = vld [vmem:[%s1702_s29 + $0x420] sm:$0xff]  ;;  %v331_v14 = vld [vmem:[%s1695_s30 + $0x428] sm:$0xff]  ;;  %v332_v17 = vld [vmem:[%s1695_s30 + $0x430] sm:$0xff] }
  0xb7   : > { %1095 = vst [vmem:[%s1717_s20 + $0x408] sm:$0xff] %v839_v6  ;;  %v842_v15 = vadd.f32 %v586_v13, %v330_v12  ;;  %v587_v16 = vld [vmem:[%s1702_s29 + $0x428] sm:$0xff]  ;;  %v588_v18 = vld [vmem:[%s1702_s29 + $0x430] sm:$0xff]  ;;  %1096 = vst [vmem:[%s1717_s20 + $0x410] sm:$0xff] %v840_v10 }
  0xb8   : > { %1097 = vst [vmem:[%s1717_s20 + $0x418] sm:$0xff] %v841_v11  ;;  %v843_v19 = vadd.f32 %v587_v16, %v331_v14  ;;  %v844_v20 = vadd.f32 %v588_v18, %v332_v17  ;;  %v333_v21 = vld [vmem:[%s1695_s30 + $0x438] sm:$0xff]  ;;  %v334_v23 = vld [vmem:[%s1695_s30 + $0x440] sm:$0xff]  ;;  %v335_v26 = vld [vmem:[%s1695_s30 + $0x448] sm:$0xff] }
  0xb9   : > { %v589_v22 = vld [vmem:[%s1702_s29 + $0x438] sm:$0xff]  ;;  %1098 = vst [vmem:[%s1717_s20 + $0x420] sm:$0xff] %v842_v15  ;;  %v590_v25 = vld [vmem:[%s1702_s29 + $0x440] sm:$0xff]  ;;  %v591_v27 = vld [vmem:[%s1702_s29 + $0x448] sm:$0xff] }
  0xba   : > { %v845_v24 = vadd.f32 %v589_v22, %v333_v21  ;;  %1099 = vst [vmem:[%s1717_s20 + $0x428] sm:$0xff] %v843_v19  ;;  %1100 = vst [vmem:[%s1717_s20 + $0x430] sm:$0xff] %v844_v20  ;;  %v846_v28 = vadd.f32 %v590_v25, %v334_v23  ;;  %v847_v29 = vadd.f32 %v591_v27, %v335_v26  ;;  %v336_v30 = vld [vmem:[%s1695_s30 + $0x450] sm:$0xff]  ;;  %v337_v32 = vld [vmem:[%s1695_s30 + $0x458] sm:$0xff] }
  0xbb   : > { %v592_v31 = vld [vmem:[%s1702_s29 + $0x450] sm:$0xff]  ;;  %v593_v34 = vld [vmem:[%s1702_s29 + $0x458] sm:$0xff]  ;;  %v338_v35 = vld [vmem:[%s1695_s30 + $0x460] sm:$0xff] }
  0xbc   : > { %1101 = vst [vmem:[%s1717_s20 + $0x438] sm:$0xff] %v845_v24  ;;  %v848_v33 = vadd.f32 %v592_v31, %v336_v30  ;;  %v594_v36 = vld [vmem:[%s1702_s29 + $0x460] sm:$0xff]  ;;  %1102 = vst [vmem:[%s1717_s20 + $0x440] sm:$0xff] %v846_v28  ;;  %v849_v37 = vadd.f32 %v593_v34, %v337_v32  ;;  %v339_v39 = vld [vmem:[%s1695_s30 + $0x468] sm:$0xff] }
  0xbd   : > { %1103 = vst [vmem:[%s1717_s20 + $0x448] sm:$0xff] %v847_v29  ;;  %v850_v38 = vadd.f32 %v594_v36, %v338_v35  ;;  %v595_v40 = vld [vmem:[%s1702_s29 + $0x468] sm:$0xff]  ;;  %v340_v41 = vld [vmem:[%s1695_s30 + $0x470] sm:$0xff]  ;;  %v341_v44 = vld [vmem:[%s1695_s30 + $0x478] sm:$0xff] }
  0xbe   : > { %1104 = vst [vmem:[%s1717_s20 + $0x450] sm:$0xff] %v848_v33  ;;  %v851_v42 = vadd.f32 %v595_v40, %v339_v39  ;;  %v596_v43 = vld [vmem:[%s1702_s29 + $0x470] sm:$0xff]  ;;  %v597_v45 = vld [vmem:[%s1702_s29 + $0x478] sm:$0xff]  ;;  %1105 = vst [vmem:[%s1717_s20 + $0x458] sm:$0xff] %v849_v37 }
  0xbf   : > { %1106 = vst [vmem:[%s1717_s20 + $0x460] sm:$0xff] %v850_v38  ;;  %v852_v46 = vadd.f32 %v596_v43, %v340_v41  ;;  %v853_v47 = vadd.f32 %v597_v45, %v341_v44  ;;  %v342_v48 = vld [vmem:[%s1695_s30 + $0x480] sm:$0xff]  ;;  %v343_v50 = vld [vmem:[%s1695_s30 + $0x488] sm:$0xff]  ;;  %v344_v53 = vld [vmem:[%s1695_s30 + $0x490] sm:$0xff] }
  0xc0   : > { %v598_v49 = vld [vmem:[%s1702_s29 + $0x480] sm:$0xff]  ;;  %1107 = vst [vmem:[%s1717_s20 + $0x468] sm:$0xff] %v851_v42  ;;  %v599_v52 = vld [vmem:[%s1702_s29 + $0x488] sm:$0xff]  ;;  %v600_v54 = vld [vmem:[%s1702_s29 + $0x490] sm:$0xff] }
  0xc1   : > { %v854_v51 = vadd.f32 %v598_v49, %v342_v48  ;;  %1108 = vst [vmem:[%s1717_s20 + $0x470] sm:$0xff] %v852_v46  ;;  %1109 = vst [vmem:[%s1717_s20 + $0x478] sm:$0xff] %v853_v47  ;;  %v855_v55 = vadd.f32 %v599_v52, %v343_v50  ;;  %v856_v56 = vadd.f32 %v600_v54, %v344_v53  ;;  %v345_v57 = vld [vmem:[%s1695_s30 + $0x498] sm:$0xff]  ;;  %v346_v59 = vld [vmem:[%s1695_s30 + $0x4a0] sm:$0xff] }
  0xc2   : > { %v601_v58 = vld [vmem:[%s1702_s29 + $0x498] sm:$0xff]  ;;  %v602_v61 = vld [vmem:[%s1702_s29 + $0x4a0] sm:$0xff]  ;;  %v347_v62 = vld [vmem:[%s1695_s30 + $0x4a8] sm:$0xff] }
  0xc3   : > { %1110 = vst [vmem:[%s1717_s20 + $0x480] sm:$0xff] %v854_v51  ;;  %v857_v60 = vadd.f32 %v601_v58, %v345_v57  ;;  %v603_v63 = vld [vmem:[%s1702_s29 + $0x4a8] sm:$0xff]  ;;  %1111 = vst [vmem:[%s1717_s20 + $0x488] sm:$0xff] %v855_v55  ;;  %v858_v0 = vadd.f32 %v602_v61, %v346_v59  ;;  %v348_v2 = vld [vmem:[%s1695_s30 + $0x4b0] sm:$0xff] }
  0xc4   : > { %1112 = vst [vmem:[%s1717_s20 + $0x490] sm:$0xff] %v856_v56  ;;  %v859_v1 = vadd.f32 %v603_v63, %v347_v62  ;;  %v604_v3 = vld [vmem:[%s1702_s29 + $0x4b0] sm:$0xff]  ;;  %v349_v4 = vld [vmem:[%s1695_s30 + $0x4b8] sm:$0xff]  ;;  %v350_v7 = vld [vmem:[%s1695_s30 + $0x4c0] sm:$0xff] }
  0xc5   : > { %1113 = vst [vmem:[%s1717_s20 + $0x498] sm:$0xff] %v857_v60  ;;  %v860_v5 = vadd.f32 %v604_v3, %v348_v2  ;;  %v605_v6 = vld [vmem:[%s1702_s29 + $0x4b8] sm:$0xff]  ;;  %v606_v8 = vld [vmem:[%s1702_s29 + $0x4c0] sm:$0xff]  ;;  %1114 = vst [vmem:[%s1717_s20 + $0x4a0] sm:$0xff] %v858_v0 }
  0xc6   : > { %1115 = vst [vmem:[%s1717_s20 + $0x4a8] sm:$0xff] %v859_v1  ;;  %v861_v9 = vadd.f32 %v605_v6, %v349_v4  ;;  %v862_v10 = vadd.f32 %v606_v8, %v350_v7  ;;  %v351_v11 = vld [vmem:[%s1695_s30 + $0x4c8] sm:$0xff]  ;;  %v352_v13 = vld [vmem:[%s1695_s30 + $0x4d0] sm:$0xff]  ;;  %v353_v16 = vld [vmem:[%s1695_s30 + $0x4d8] sm:$0xff] }
  0xc7   : > { %v607_v12 = vld [vmem:[%s1702_s29 + $0x4c8] sm:$0xff]  ;;  %1116 = vst [vmem:[%s1717_s20 + $0x4b0] sm:$0xff] %v860_v5  ;;  %v608_v15 = vld [vmem:[%s1702_s29 + $0x4d0] sm:$0xff]  ;;  %v609_v17 = vld [vmem:[%s1702_s29 + $0x4d8] sm:$0xff] }
  0xc8   : > { %v863_v14 = vadd.f32 %v607_v12, %v351_v11  ;;  %1117 = vst [vmem:[%s1717_s20 + $0x4b8] sm:$0xff] %v861_v9  ;;  %1118 = vst [vmem:[%s1717_s20 + $0x4c0] sm:$0xff] %v862_v10  ;;  %v864_v18 = vadd.f32 %v608_v15, %v352_v13  ;;  %v865_v19 = vadd.f32 %v609_v17, %v353_v16  ;;  %v354_v20 = vld [vmem:[%s1695_s30 + $0x4e0] sm:$0xff]  ;;  %v355_v22 = vld [vmem:[%s1695_s30 + $0x4e8] sm:$0xff] }
  0xc9   : > { %v610_v21 = vld [vmem:[%s1702_s29 + $0x4e0] sm:$0xff]  ;;  %v611_v24 = vld [vmem:[%s1702_s29 + $0x4e8] sm:$0xff]  ;;  %v356_v25 = vld [vmem:[%s1695_s30 + $0x4f0] sm:$0xff] }
  0xca   : > { %1119 = vst [vmem:[%s1717_s20 + $0x4c8] sm:$0xff] %v863_v14  ;;  %v866_v23 = vadd.f32 %v610_v21, %v354_v20  ;;  %v612_v26 = vld [vmem:[%s1702_s29 + $0x4f0] sm:$0xff]  ;;  %1120 = vst [vmem:[%s1717_s20 + $0x4d0] sm:$0xff] %v864_v18  ;;  %v867_v27 = vadd.f32 %v611_v24, %v355_v22  ;;  %v357_v29 = vld [vmem:[%s1695_s30 + $0x4f8] sm:$0xff] }
  0xcb   : > { %1121 = vst [vmem:[%s1717_s20 + $0x4d8] sm:$0xff] %v865_v19  ;;  %v868_v28 = vadd.f32 %v612_v26, %v356_v25  ;;  %v613_v30 = vld [vmem:[%s1702_s29 + $0x4f8] sm:$0xff]  ;;  %v358_v31 = vld [vmem:[%s1695_s30 + $0x500] sm:$0xff]  ;;  %v359_v34 = vld [vmem:[%s1695_s30 + $0x508] sm:$0xff] }
  0xcc   : > { %1122 = vst [vmem:[%s1717_s20 + $0x4e0] sm:$0xff] %v866_v23  ;;  %v869_v32 = vadd.f32 %v613_v30, %v357_v29  ;;  %v614_v33 = vld [vmem:[%s1702_s29 + $0x500] sm:$0xff]  ;;  %v615_v35 = vld [vmem:[%s1702_s29 + $0x508] sm:$0xff]  ;;  %1123 = vst [vmem:[%s1717_s20 + $0x4e8] sm:$0xff] %v867_v27 }
  0xcd   : > { %1124 = vst [vmem:[%s1717_s20 + $0x4f0] sm:$0xff] %v868_v28  ;;  %v870_v36 = vadd.f32 %v614_v33, %v358_v31  ;;  %v871_v37 = vadd.f32 %v615_v35, %v359_v34  ;;  %v360_v38 = vld [vmem:[%s1695_s30 + $0x510] sm:$0xff]  ;;  %v361_v40 = vld [vmem:[%s1695_s30 + $0x518] sm:$0xff]  ;;  %v362_v43 = vld [vmem:[%s1695_s30 + $0x520] sm:$0xff] }
  0xce   : > { %v616_v39 = vld [vmem:[%s1702_s29 + $0x510] sm:$0xff]  ;;  %1125 = vst [vmem:[%s1717_s20 + $0x4f8] sm:$0xff] %v869_v32  ;;  %v617_v42 = vld [vmem:[%s1702_s29 + $0x518] sm:$0xff]  ;;  %v618_v44 = vld [vmem:[%s1702_s29 + $0x520] sm:$0xff] }
  0xcf   : > { %v872_v41 = vadd.f32 %v616_v39, %v360_v38  ;;  %1126 = vst [vmem:[%s1717_s20 + $0x500] sm:$0xff] %v870_v36  ;;  %1127 = vst [vmem:[%s1717_s20 + $0x508] sm:$0xff] %v871_v37  ;;  %v873_v45 = vadd.f32 %v617_v42, %v361_v40  ;;  %v874_v46 = vadd.f32 %v618_v44, %v362_v43  ;;  %v363_v47 = vld [vmem:[%s1695_s30 + $0x528] sm:$0xff]  ;;  %v364_v49 = vld [vmem:[%s1695_s30 + $0x530] sm:$0xff] }
  0xd0   : > { %v619_v48 = vld [vmem:[%s1702_s29 + $0x528] sm:$0xff]  ;;  %v620_v51 = vld [vmem:[%s1702_s29 + $0x530] sm:$0xff]  ;;  %v365_v52 = vld [vmem:[%s1695_s30 + $0x538] sm:$0xff] }
  0xd1   : > { %1128 = vst [vmem:[%s1717_s20 + $0x510] sm:$0xff] %v872_v41  ;;  %v875_v50 = vadd.f32 %v619_v48, %v363_v47  ;;  %v621_v53 = vld [vmem:[%s1702_s29 + $0x538] sm:$0xff]  ;;  %1129 = vst [vmem:[%s1717_s20 + $0x518] sm:$0xff] %v873_v45  ;;  %v876_v54 = vadd.f32 %v620_v51, %v364_v49  ;;  %v366_v56 = vld [vmem:[%s1695_s30 + $0x540] sm:$0xff] }
  0xd2   : > { %1130 = vst [vmem:[%s1717_s20 + $0x520] sm:$0xff] %v874_v46  ;;  %v877_v55 = vadd.f32 %v621_v53, %v365_v52  ;;  %v622_v57 = vld [vmem:[%s1702_s29 + $0x540] sm:$0xff]  ;;  %v367_v58 = vld [vmem:[%s1695_s30 + $0x548] sm:$0xff]  ;;  %v368_v61 = vld [vmem:[%s1695_s30 + $0x550] sm:$0xff] }
  0xd3   : > { %1131 = vst [vmem:[%s1717_s20 + $0x528] sm:$0xff] %v875_v50  ;;  %v878_v59 = vadd.f32 %v622_v57, %v366_v56  ;;  %v623_v60 = vld [vmem:[%s1702_s29 + $0x548] sm:$0xff]  ;;  %v624_v62 = vld [vmem:[%s1702_s29 + $0x550] sm:$0xff]  ;;  %1132 = vst [vmem:[%s1717_s20 + $0x530] sm:$0xff] %v876_v54 }
  0xd4   : > { %1133 = vst [vmem:[%s1717_s20 + $0x538] sm:$0xff] %v877_v55  ;;  %v879_v63 = vadd.f32 %v623_v60, %v367_v58  ;;  %v880_v0 = vadd.f32 %v624_v62, %v368_v61  ;;  %v369_v1 = vld [vmem:[%s1695_s30 + $0x558] sm:$0xff]  ;;  %v370_v3 = vld [vmem:[%s1695_s30 + $0x560] sm:$0xff]  ;;  %v371_v6 = vld [vmem:[%s1695_s30 + $0x568] sm:$0xff] }
  0xd5   : > { %v625_v2 = vld [vmem:[%s1702_s29 + $0x558] sm:$0xff]  ;;  %1134 = vst [vmem:[%s1717_s20 + $0x540] sm:$0xff] %v878_v59  ;;  %v626_v5 = vld [vmem:[%s1702_s29 + $0x560] sm:$0xff]  ;;  %v627_v7 = vld [vmem:[%s1702_s29 + $0x568] sm:$0xff] }
  0xd6   : > { %v881_v4 = vadd.f32 %v625_v2, %v369_v1  ;;  %1135 = vst [vmem:[%s1717_s20 + $0x548] sm:$0xff] %v879_v63  ;;  %1136 = vst [vmem:[%s1717_s20 + $0x550] sm:$0xff] %v880_v0  ;;  %v882_v8 = vadd.f32 %v626_v5, %v370_v3  ;;  %v883_v9 = vadd.f32 %v627_v7, %v371_v6  ;;  %v372_v10 = vld [vmem:[%s1695_s30 + $0x570] sm:$0xff]  ;;  %v373_v12 = vld [vmem:[%s1695_s30 + $0x578] sm:$0xff] }
  0xd7   : > { %v628_v11 = vld [vmem:[%s1702_s29 + $0x570] sm:$0xff]  ;;  %v629_v14 = vld [vmem:[%s1702_s29 + $0x578] sm:$0xff]  ;;  %v374_v15 = vld [vmem:[%s1695_s30 + $0x580] sm:$0xff] }
  0xd8   : > { %1137 = vst [vmem:[%s1717_s20 + $0x558] sm:$0xff] %v881_v4  ;;  %v884_v13 = vadd.f32 %v628_v11, %v372_v10  ;;  %v630_v16 = vld [vmem:[%s1702_s29 + $0x580] sm:$0xff]  ;;  %1138 = vst [vmem:[%s1717_s20 + $0x560] sm:$0xff] %v882_v8  ;;  %v885_v17 = vadd.f32 %v629_v14, %v373_v12  ;;  %v375_v19 = vld [vmem:[%s1695_s30 + $0x588] sm:$0xff] }
  0xd9   : > { %1139 = vst [vmem:[%s1717_s20 + $0x568] sm:$0xff] %v883_v9  ;;  %v886_v18 = vadd.f32 %v630_v16, %v374_v15  ;;  %v631_v20 = vld [vmem:[%s1702_s29 + $0x588] sm:$0xff]  ;;  %v376_v21 = vld [vmem:[%s1695_s30 + $0x590] sm:$0xff]  ;;  %v377_v24 = vld [vmem:[%s1695_s30 + $0x598] sm:$0xff] }
  0xda   : > { %1140 = vst [vmem:[%s1717_s20 + $0x570] sm:$0xff] %v884_v13  ;;  %v887_v22 = vadd.f32 %v631_v20, %v375_v19  ;;  %v632_v23 = vld [vmem:[%s1702_s29 + $0x590] sm:$0xff]  ;;  %v633_v25 = vld [vmem:[%s1702_s29 + $0x598] sm:$0xff]  ;;  %1141 = vst [vmem:[%s1717_s20 + $0x578] sm:$0xff] %v885_v17 }
  0xdb   : > { %1142 = vst [vmem:[%s1717_s20 + $0x580] sm:$0xff] %v886_v18  ;;  %v888_v26 = vadd.f32 %v632_v23, %v376_v21  ;;  %v889_v27 = vadd.f32 %v633_v25, %v377_v24  ;;  %v378_v28 = vld [vmem:[%s1695_s30 + $0x5a0] sm:$0xff]  ;;  %v379_v30 = vld [vmem:[%s1695_s30 + $0x5a8] sm:$0xff]  ;;  %v380_v33 = vld [vmem:[%s1695_s30 + $0x5b0] sm:$0xff] }
  0xdc   : > { %v634_v29 = vld [vmem:[%s1702_s29 + $0x5a0] sm:$0xff]  ;;  %1143 = vst [vmem:[%s1717_s20 + $0x588] sm:$0xff] %v887_v22  ;;  %v635_v32 = vld [vmem:[%s1702_s29 + $0x5a8] sm:$0xff]  ;;  %v636_v34 = vld [vmem:[%s1702_s29 + $0x5b0] sm:$0xff] }
  0xdd   : > { %v890_v31 = vadd.f32 %v634_v29, %v378_v28  ;;  %1144 = vst [vmem:[%s1717_s20 + $0x590] sm:$0xff] %v888_v26  ;;  %1145 = vst [vmem:[%s1717_s20 + $0x598] sm:$0xff] %v889_v27  ;;  %v891_v35 = vadd.f32 %v635_v32, %v379_v30  ;;  %v892_v36 = vadd.f32 %v636_v34, %v380_v33  ;;  %v381_v37 = vld [vmem:[%s1695_s30 + $0x5b8] sm:$0xff]  ;;  %v382_v39 = vld [vmem:[%s1695_s30 + $0x5c0] sm:$0xff] }
  0xde   : > { %v637_v38 = vld [vmem:[%s1702_s29 + $0x5b8] sm:$0xff]  ;;  %v638_v41 = vld [vmem:[%s1702_s29 + $0x5c0] sm:$0xff]  ;;  %v383_v42 = vld [vmem:[%s1695_s30 + $0x5c8] sm:$0xff] }
  0xdf   : > { %1146 = vst [vmem:[%s1717_s20 + $0x5a0] sm:$0xff] %v890_v31  ;;  %v893_v40 = vadd.f32 %v637_v38, %v381_v37  ;;  %v639_v43 = vld [vmem:[%s1702_s29 + $0x5c8] sm:$0xff]  ;;  %1147 = vst [vmem:[%s1717_s20 + $0x5a8] sm:$0xff] %v891_v35  ;;  %v894_v44 = vadd.f32 %v638_v41, %v382_v39  ;;  %v384_v46 = vld [vmem:[%s1695_s30 + $0x5d0] sm:$0xff] }
  0xe0   : > { %1148 = vst [vmem:[%s1717_s20 + $0x5b0] sm:$0xff] %v892_v36  ;;  %v895_v45 = vadd.f32 %v639_v43, %v383_v42  ;;  %v640_v47 = vld [vmem:[%s1702_s29 + $0x5d0] sm:$0xff]  ;;  %v385_v48 = vld [vmem:[%s1695_s30 + $0x5d8] sm:$0xff]  ;;  %v386_v51 = vld [vmem:[%s1695_s30 + $0x5e0] sm:$0xff] }
  0xe1   : > { %1149 = vst [vmem:[%s1717_s20 + $0x5b8] sm:$0xff] %v893_v40  ;;  %v896_v49 = vadd.f32 %v640_v47, %v384_v46  ;;  %v641_v50 = vld [vmem:[%s1702_s29 + $0x5d8] sm:$0xff]  ;;  %v642_v52 = vld [vmem:[%s1702_s29 + $0x5e0] sm:$0xff]  ;;  %1150 = vst [vmem:[%s1717_s20 + $0x5c0] sm:$0xff] %v894_v44 }
  0xe2   : > { %1151 = vst [vmem:[%s1717_s20 + $0x5c8] sm:$0xff] %v895_v45  ;;  %v897_v53 = vadd.f32 %v641_v50, %v385_v48  ;;  %v898_v54 = vadd.f32 %v642_v52, %v386_v51  ;;  %v387_v55 = vld [vmem:[%s1695_s30 + $0x5e8] sm:$0xff]  ;;  %v388_v57 = vld [vmem:[%s1695_s30 + $0x5f0] sm:$0xff]  ;;  %v389_v60 = vld [vmem:[%s1695_s30 + $0x5f8] sm:$0xff] }
  0xe3   : > { %v643_v56 = vld [vmem:[%s1702_s29 + $0x5e8] sm:$0xff]  ;;  %1152 = vst [vmem:[%s1717_s20 + $0x5d0] sm:$0xff] %v896_v49  ;;  %v644_v59 = vld [vmem:[%s1702_s29 + $0x5f0] sm:$0xff]  ;;  %v645_v61 = vld [vmem:[%s1702_s29 + $0x5f8] sm:$0xff] }
  0xe4   : > { %v899_v58 = vadd.f32 %v643_v56, %v387_v55  ;;  %1153 = vst [vmem:[%s1717_s20 + $0x5d8] sm:$0xff] %v897_v53  ;;  %1154 = vst [vmem:[%s1717_s20 + $0x5e0] sm:$0xff] %v898_v54  ;;  %v900_v62 = vadd.f32 %v644_v59, %v388_v57  ;;  %v901_v63 = vadd.f32 %v645_v61, %v389_v60  ;;  %v390_v0 = vld [vmem:[%s1695_s30 + $0x600] sm:$0xff]  ;;  %v391_v2 = vld [vmem:[%s1695_s30 + $0x608] sm:$0xff] }
  0xe5   : > { %v646_v1 = vld [vmem:[%s1702_s29 + $0x600] sm:$0xff]  ;;  %v647_v4 = vld [vmem:[%s1702_s29 + $0x608] sm:$0xff]  ;;  %v392_v5 = vld [vmem:[%s1695_s30 + $0x610] sm:$0xff] }
  0xe6   : > { %1155 = vst [vmem:[%s1717_s20 + $0x5e8] sm:$0xff] %v899_v58  ;;  %v902_v3 = vadd.f32 %v646_v1, %v390_v0  ;;  %v648_v6 = vld [vmem:[%s1702_s29 + $0x610] sm:$0xff]  ;;  %1156 = vst [vmem:[%s1717_s20 + $0x5f0] sm:$0xff] %v900_v62  ;;  %v903_v7 = vadd.f32 %v647_v4, %v391_v2  ;;  %v393_v9 = vld [vmem:[%s1695_s30 + $0x618] sm:$0xff] }
  0xe7   : > { %1157 = vst [vmem:[%s1717_s20 + $0x5f8] sm:$0xff] %v901_v63  ;;  %v904_v8 = vadd.f32 %v648_v6, %v392_v5  ;;  %v649_v10 = vld [vmem:[%s1702_s29 + $0x618] sm:$0xff]  ;;  %v394_v11 = vld [vmem:[%s1695_s30 + $0x620] sm:$0xff]  ;;  %v395_v14 = vld [vmem:[%s1695_s30 + $0x628] sm:$0xff] }
  0xe8   : > { %1158 = vst [vmem:[%s1717_s20 + $0x600] sm:$0xff] %v902_v3  ;;  %v905_v12 = vadd.f32 %v649_v10, %v393_v9  ;;  %v650_v13 = vld [vmem:[%s1702_s29 + $0x620] sm:$0xff]  ;;  %v651_v15 = vld [vmem:[%s1702_s29 + $0x628] sm:$0xff]  ;;  %1159 = vst [vmem:[%s1717_s20 + $0x608] sm:$0xff] %v903_v7 }
  0xe9   : > { %1160 = vst [vmem:[%s1717_s20 + $0x610] sm:$0xff] %v904_v8  ;;  %v906_v16 = vadd.f32 %v650_v13, %v394_v11  ;;  %v907_v17 = vadd.f32 %v651_v15, %v395_v14  ;;  %v396_v18 = vld [vmem:[%s1695_s30 + $0x630] sm:$0xff]  ;;  %v397_v20 = vld [vmem:[%s1695_s30 + $0x638] sm:$0xff]  ;;  %v398_v23 = vld [vmem:[%s1695_s30 + $0x640] sm:$0xff] }
  0xea   : > { %v652_v19 = vld [vmem:[%s1702_s29 + $0x630] sm:$0xff]  ;;  %1161 = vst [vmem:[%s1717_s20 + $0x618] sm:$0xff] %v905_v12  ;;  %v653_v22 = vld [vmem:[%s1702_s29 + $0x638] sm:$0xff]  ;;  %v654_v24 = vld [vmem:[%s1702_s29 + $0x640] sm:$0xff] }
  0xeb   : > { %v908_v21 = vadd.f32 %v652_v19, %v396_v18  ;;  %1162 = vst [vmem:[%s1717_s20 + $0x620] sm:$0xff] %v906_v16  ;;  %1163 = vst [vmem:[%s1717_s20 + $0x628] sm:$0xff] %v907_v17  ;;  %v909_v25 = vadd.f32 %v653_v22, %v397_v20  ;;  %v910_v26 = vadd.f32 %v654_v24, %v398_v23  ;;  %v399_v27 = vld [vmem:[%s1695_s30 + $0x648] sm:$0xff]  ;;  %v400_v29 = vld [vmem:[%s1695_s30 + $0x650] sm:$0xff] }
  0xec   : > { %v655_v28 = vld [vmem:[%s1702_s29 + $0x648] sm:$0xff]  ;;  %v656_v31 = vld [vmem:[%s1702_s29 + $0x650] sm:$0xff]  ;;  %v401_v32 = vld [vmem:[%s1695_s30 + $0x658] sm:$0xff] }
  0xed   : > { %1164 = vst [vmem:[%s1717_s20 + $0x630] sm:$0xff] %v908_v21  ;;  %v911_v30 = vadd.f32 %v655_v28, %v399_v27  ;;  %v657_v33 = vld [vmem:[%s1702_s29 + $0x658] sm:$0xff]  ;;  %1165 = vst [vmem:[%s1717_s20 + $0x638] sm:$0xff] %v909_v25  ;;  %v912_v34 = vadd.f32 %v656_v31, %v400_v29  ;;  %v402_v36 = vld [vmem:[%s1695_s30 + $0x660] sm:$0xff] }
  0xee   : > { %1166 = vst [vmem:[%s1717_s20 + $0x640] sm:$0xff] %v910_v26  ;;  %v913_v35 = vadd.f32 %v657_v33, %v401_v32  ;;  %v658_v37 = vld [vmem:[%s1702_s29 + $0x660] sm:$0xff]  ;;  %v403_v38 = vld [vmem:[%s1695_s30 + $0x668] sm:$0xff]  ;;  %v404_v41 = vld [vmem:[%s1695_s30 + $0x670] sm:$0xff] }
  0xef   : > { %1167 = vst [vmem:[%s1717_s20 + $0x648] sm:$0xff] %v911_v30  ;;  %v914_v39 = vadd.f32 %v658_v37, %v402_v36  ;;  %v659_v40 = vld [vmem:[%s1702_s29 + $0x668] sm:$0xff]  ;;  %v660_v42 = vld [vmem:[%s1702_s29 + $0x670] sm:$0xff]  ;;  %1168 = vst [vmem:[%s1717_s20 + $0x650] sm:$0xff] %v912_v34 }
  0xf0   : > { %1169 = vst [vmem:[%s1717_s20 + $0x658] sm:$0xff] %v913_v35  ;;  %v915_v43 = vadd.f32 %v659_v40, %v403_v38  ;;  %v916_v44 = vadd.f32 %v660_v42, %v404_v41  ;;  %v405_v45 = vld [vmem:[%s1695_s30 + $0x678] sm:$0xff]  ;;  %v406_v47 = vld [vmem:[%s1695_s30 + $0x680] sm:$0xff]  ;;  %v407_v50 = vld [vmem:[%s1695_s30 + $0x688] sm:$0xff] }
  0xf1   : > { %v661_v46 = vld [vmem:[%s1702_s29 + $0x678] sm:$0xff]  ;;  %1170 = vst [vmem:[%s1717_s20 + $0x660] sm:$0xff] %v914_v39  ;;  %v662_v49 = vld [vmem:[%s1702_s29 + $0x680] sm:$0xff]  ;;  %v663_v51 = vld [vmem:[%s1702_s29 + $0x688] sm:$0xff] }
  0xf2   : > { %v917_v48 = vadd.f32 %v661_v46, %v405_v45  ;;  %1171 = vst [vmem:[%s1717_s20 + $0x668] sm:$0xff] %v915_v43  ;;  %1172 = vst [vmem:[%s1717_s20 + $0x670] sm:$0xff] %v916_v44  ;;  %v918_v52 = vadd.f32 %v662_v49, %v406_v47  ;;  %v919_v53 = vadd.f32 %v663_v51, %v407_v50  ;;  %v408_v54 = vld [vmem:[%s1695_s30 + $0x690] sm:$0xff]  ;;  %v409_v56 = vld [vmem:[%s1695_s30 + $0x698] sm:$0xff] }
  0xf3   : > { %v664_v55 = vld [vmem:[%s1702_s29 + $0x690] sm:$0xff]  ;;  %v665_v58 = vld [vmem:[%s1702_s29 + $0x698] sm:$0xff]  ;;  %v410_v59 = vld [vmem:[%s1695_s30 + $0x6a0] sm:$0xff] }
  0xf4   : > { %1173 = vst [vmem:[%s1717_s20 + $0x678] sm:$0xff] %v917_v48  ;;  %v920_v57 = vadd.f32 %v664_v55, %v408_v54  ;;  %v666_v60 = vld [vmem:[%s1702_s29 + $0x6a0] sm:$0xff]  ;;  %1174 = vst [vmem:[%s1717_s20 + $0x680] sm:$0xff] %v918_v52  ;;  %v921_v61 = vadd.f32 %v665_v58, %v409_v56  ;;  %v411_v63 = vld [vmem:[%s1695_s30 + $0x6a8] sm:$0xff] }
  0xf5   : > { %1175 = vst [vmem:[%s1717_s20 + $0x688] sm:$0xff] %v919_v53  ;;  %v922_v62 = vadd.f32 %v666_v60, %v410_v59  ;;  %v667_v0 = vld [vmem:[%s1702_s29 + $0x6a8] sm:$0xff]  ;;  %v412_v1 = vld [vmem:[%s1695_s30 + $0x6b0] sm:$0xff]  ;;  %v413_v4 = vld [vmem:[%s1695_s30 + $0x6b8] sm:$0xff] }
  0xf6   : > { %1176 = vst [vmem:[%s1717_s20 + $0x690] sm:$0xff] %v920_v57  ;;  %v923_v2 = vadd.f32 %v667_v0, %v411_v63  ;;  %v668_v3 = vld [vmem:[%s1702_s29 + $0x6b0] sm:$0xff]  ;;  %v669_v5 = vld [vmem:[%s1702_s29 + $0x6b8] sm:$0xff]  ;;  %1177 = vst [vmem:[%s1717_s20 + $0x698] sm:$0xff] %v921_v61 }
  0xf7   : > { %1178 = vst [vmem:[%s1717_s20 + $0x6a0] sm:$0xff] %v922_v62  ;;  %v924_v6 = vadd.f32 %v668_v3, %v412_v1  ;;  %v925_v7 = vadd.f32 %v669_v5, %v413_v4  ;;  %v414_v8 = vld [vmem:[%s1695_s30 + $0x6c0] sm:$0xff]  ;;  %v415_v10 = vld [vmem:[%s1695_s30 + $0x6c8] sm:$0xff]  ;;  %v416_v13 = vld [vmem:[%s1695_s30 + $0x6d0] sm:$0xff] }
  0xf8   : > { %v670_v9 = vld [vmem:[%s1702_s29 + $0x6c0] sm:$0xff]  ;;  %1179 = vst [vmem:[%s1717_s20 + $0x6a8] sm:$0xff] %v923_v2  ;;  %v671_v12 = vld [vmem:[%s1702_s29 + $0x6c8] sm:$0xff]  ;;  %v672_v14 = vld [vmem:[%s1702_s29 + $0x6d0] sm:$0xff] }
  0xf9   : > { %v926_v11 = vadd.f32 %v670_v9, %v414_v8  ;;  %1180 = vst [vmem:[%s1717_s20 + $0x6b0] sm:$0xff] %v924_v6  ;;  %1181 = vst [vmem:[%s1717_s20 + $0x6b8] sm:$0xff] %v925_v7  ;;  %v927_v15 = vadd.f32 %v671_v12, %v415_v10  ;;  %v928_v16 = vadd.f32 %v672_v14, %v416_v13  ;;  %v417_v17 = vld [vmem:[%s1695_s30 + $0x6d8] sm:$0xff]  ;;  %v418_v19 = vld [vmem:[%s1695_s30 + $0x6e0] sm:$0xff] }
  0xfa   : > { %v673_v18 = vld [vmem:[%s1702_s29 + $0x6d8] sm:$0xff]  ;;  %v674_v21 = vld [vmem:[%s1702_s29 + $0x6e0] sm:$0xff]  ;;  %v419_v22 = vld [vmem:[%s1695_s30 + $0x6e8] sm:$0xff] }
  0xfb   : > { %1182 = vst [vmem:[%s1717_s20 + $0x6c0] sm:$0xff] %v926_v11  ;;  %v929_v20 = vadd.f32 %v673_v18, %v417_v17  ;;  %v675_v23 = vld [vmem:[%s1702_s29 + $0x6e8] sm:$0xff]  ;;  %1183 = vst [vmem:[%s1717_s20 + $0x6c8] sm:$0xff] %v927_v15  ;;  %v930_v24 = vadd.f32 %v674_v21, %v418_v19  ;;  %v420_v26 = vld [vmem:[%s1695_s30 + $0x6f0] sm:$0xff] }
  0xfc   : > { %1184 = vst [vmem:[%s1717_s20 + $0x6d0] sm:$0xff] %v928_v16  ;;  %v931_v25 = vadd.f32 %v675_v23, %v419_v22  ;;  %v676_v27 = vld [vmem:[%s1702_s29 + $0x6f0] sm:$0xff]  ;;  %v421_v28 = vld [vmem:[%s1695_s30 + $0x6f8] sm:$0xff]  ;;  %v422_v31 = vld [vmem:[%s1695_s30 + $0x700] sm:$0xff] }
  0xfd   : > { %1185 = vst [vmem:[%s1717_s20 + $0x6d8] sm:$0xff] %v929_v20  ;;  %v932_v29 = vadd.f32 %v676_v27, %v420_v26  ;;  %v677_v30 = vld [vmem:[%s1702_s29 + $0x6f8] sm:$0xff]  ;;  %v678_v32 = vld [vmem:[%s1702_s29 + $0x700] sm:$0xff]  ;;  %1186 = vst [vmem:[%s1717_s20 + $0x6e0] sm:$0xff] %v930_v24 }
  0xfe   : > { %1187 = vst [vmem:[%s1717_s20 + $0x6e8] sm:$0xff] %v931_v25  ;;  %v933_v33 = vadd.f32 %v677_v30, %v421_v28  ;;  %v934_v34 = vadd.f32 %v678_v32, %v422_v31  ;;  %v423_v35 = vld [vmem:[%s1695_s30 + $0x708] sm:$0xff]  ;;  %v424_v37 = vld [vmem:[%s1695_s30 + $0x710] sm:$0xff]  ;;  %v425_v40 = vld [vmem:[%s1695_s30 + $0x718] sm:$0xff] }
  0xff   : > { %v679_v36 = vld [vmem:[%s1702_s29 + $0x708] sm:$0xff]  ;;  %1188 = vst [vmem:[%s1717_s20 + $0x6f0] sm:$0xff] %v932_v29  ;;  %v680_v39 = vld [vmem:[%s1702_s29 + $0x710] sm:$0xff]  ;;  %v681_v41 = vld [vmem:[%s1702_s29 + $0x718] sm:$0xff] }
 0x100   : > { %v935_v38 = vadd.f32 %v679_v36, %v423_v35  ;;  %1189 = vst [vmem:[%s1717_s20 + $0x6f8] sm:$0xff] %v933_v33  ;;  %1190 = vst [vmem:[%s1717_s20 + $0x700] sm:$0xff] %v934_v34  ;;  %v936_v42 = vadd.f32 %v680_v39, %v424_v37  ;;  %v937_v43 = vadd.f32 %v681_v41, %v425_v40  ;;  %v426_v44 = vld [vmem:[%s1695_s30 + $0x720] sm:$0xff]  ;;  %v427_v46 = vld [vmem:[%s1695_s30 + $0x728] sm:$0xff] }
 0x101   : > { %v682_v45 = vld [vmem:[%s1702_s29 + $0x720] sm:$0xff]  ;;  %v683_v48 = vld [vmem:[%s1702_s29 + $0x728] sm:$0xff]  ;;  %v428_v49 = vld [vmem:[%s1695_s30 + $0x730] sm:$0xff] }
 0x102   : > { %1191 = vst [vmem:[%s1717_s20 + $0x708] sm:$0xff] %v935_v38  ;;  %v938_v47 = vadd.f32 %v682_v45, %v426_v44  ;;  %v684_v50 = vld [vmem:[%s1702_s29 + $0x730] sm:$0xff]  ;;  %1192 = vst [vmem:[%s1717_s20 + $0x710] sm:$0xff] %v936_v42  ;;  %v939_v51 = vadd.f32 %v683_v48, %v427_v46  ;;  %v429_v53 = vld [vmem:[%s1695_s30 + $0x738] sm:$0xff] }
 0x103   : > { %1193 = vst [vmem:[%s1717_s20 + $0x718] sm:$0xff] %v937_v43  ;;  %v940_v52 = vadd.f32 %v684_v50, %v428_v49  ;;  %v685_v54 = vld [vmem:[%s1702_s29 + $0x738] sm:$0xff]  ;;  %v430_v55 = vld [vmem:[%s1695_s30 + $0x740] sm:$0xff]  ;;  %v431_v58 = vld [vmem:[%s1695_s30 + $0x748] sm:$0xff] }
 0x104   : > { %1194 = vst [vmem:[%s1717_s20 + $0x720] sm:$0xff] %v938_v47  ;;  %v941_v56 = vadd.f32 %v685_v54, %v429_v53  ;;  %v686_v57 = vld [vmem:[%s1702_s29 + $0x740] sm:$0xff]  ;;  %v687_v59 = vld [vmem:[%s1702_s29 + $0x748] sm:$0xff]  ;;  %1195 = vst [vmem:[%s1717_s20 + $0x728] sm:$0xff] %v939_v51 }
 0x105   : > { %1196 = vst [vmem:[%s1717_s20 + $0x730] sm:$0xff] %v940_v52  ;;  %v942_v60 = vadd.f32 %v686_v57, %v430_v55  ;;  %v943_v61 = vadd.f32 %v687_v59, %v431_v58  ;;  %v432_v62 = vld [vmem:[%s1695_s30 + $0x750] sm:$0xff]  ;;  %v433_v0 = vld [vmem:[%s1695_s30 + $0x758] sm:$0xff]  ;;  %v434_v3 = vld [vmem:[%s1695_s30 + $0x760] sm:$0xff] }
 0x106   : > { %v688_v63 = vld [vmem:[%s1702_s29 + $0x750] sm:$0xff]  ;;  %1197 = vst [vmem:[%s1717_s20 + $0x738] sm:$0xff] %v941_v56  ;;  %v689_v2 = vld [vmem:[%s1702_s29 + $0x758] sm:$0xff]  ;;  %v690_v4 = vld [vmem:[%s1702_s29 + $0x760] sm:$0xff] }
 0x107   : > { %v944_v1 = vadd.f32 %v688_v63, %v432_v62  ;;  %1198 = vst [vmem:[%s1717_s20 + $0x740] sm:$0xff] %v942_v60  ;;  %1199 = vst [vmem:[%s1717_s20 + $0x748] sm:$0xff] %v943_v61  ;;  %v945_v5 = vadd.f32 %v689_v2, %v433_v0  ;;  %v946_v6 = vadd.f32 %v690_v4, %v434_v3  ;;  %v435_v7 = vld [vmem:[%s1695_s30 + $0x768] sm:$0xff]  ;;  %v436_v9 = vld [vmem:[%s1695_s30 + $0x770] sm:$0xff] }
 0x108   : > { %v691_v8 = vld [vmem:[%s1702_s29 + $0x768] sm:$0xff]  ;;  %v692_v11 = vld [vmem:[%s1702_s29 + $0x770] sm:$0xff]  ;;  %v437_v12 = vld [vmem:[%s1695_s30 + $0x778] sm:$0xff] }
 0x109   : > { %1200 = vst [vmem:[%s1717_s20 + $0x750] sm:$0xff] %v944_v1  ;;  %v947_v10 = vadd.f32 %v691_v8, %v435_v7  ;;  %v693_v13 = vld [vmem:[%s1702_s29 + $0x778] sm:$0xff]  ;;  %1201 = vst [vmem:[%s1717_s20 + $0x758] sm:$0xff] %v945_v5  ;;  %v948_v14 = vadd.f32 %v692_v11, %v436_v9  ;;  %v438_v16 = vld [vmem:[%s1695_s30 + $0x780] sm:$0xff] }
 0x10a   : > { %1202 = vst [vmem:[%s1717_s20 + $0x760] sm:$0xff] %v946_v6  ;;  %v949_v15 = vadd.f32 %v693_v13, %v437_v12  ;;  %v694_v17 = vld [vmem:[%s1702_s29 + $0x780] sm:$0xff]  ;;  %v439_v18 = vld [vmem:[%s1695_s30 + $0x788] sm:$0xff]  ;;  %v440_v21 = vld [vmem:[%s1695_s30 + $0x790] sm:$0xff] }
 0x10b   : > { %1203 = vst [vmem:[%s1717_s20 + $0x768] sm:$0xff] %v947_v10  ;;  %v950_v19 = vadd.f32 %v694_v17, %v438_v16  ;;  %v695_v20 = vld [vmem:[%s1702_s29 + $0x788] sm:$0xff]  ;;  %v696_v22 = vld [vmem:[%s1702_s29 + $0x790] sm:$0xff]  ;;  %1204 = vst [vmem:[%s1717_s20 + $0x770] sm:$0xff] %v948_v14 }
 0x10c   : > { %1205 = vst [vmem:[%s1717_s20 + $0x778] sm:$0xff] %v949_v15  ;;  %v951_v23 = vadd.f32 %v695_v20, %v439_v18  ;;  %v952_v24 = vadd.f32 %v696_v22, %v440_v21  ;;  %v441_v25 = vld [vmem:[%s1695_s30 + $0x798] sm:$0xff]  ;;  %v442_v27 = vld [vmem:[%s1695_s30 + $0x7a0] sm:$0xff]  ;;  %v443_v30 = vld [vmem:[%s1695_s30 + $0x7a8] sm:$0xff] }
 0x10d   : > { %v697_v26 = vld [vmem:[%s1702_s29 + $0x798] sm:$0xff]  ;;  %1206 = vst [vmem:[%s1717_s20 + $0x780] sm:$0xff] %v950_v19  ;;  %v698_v29 = vld [vmem:[%s1702_s29 + $0x7a0] sm:$0xff]  ;;  %v699_v31 = vld [vmem:[%s1702_s29 + $0x7a8] sm:$0xff] }
 0x10e   : > { %v953_v28 = vadd.f32 %v697_v26, %v441_v25  ;;  %1207 = vst [vmem:[%s1717_s20 + $0x788] sm:$0xff] %v951_v23  ;;  %1208 = vst [vmem:[%s1717_s20 + $0x790] sm:$0xff] %v952_v24  ;;  %v954_v32 = vadd.f32 %v698_v29, %v442_v27  ;;  %v955_v33 = vadd.f32 %v699_v31, %v443_v30  ;;  %v444_v34 = vld [vmem:[%s1695_s30 + $0x7b0] sm:$0xff]  ;;  %v445_v36 = vld [vmem:[%s1695_s30 + $0x7b8] sm:$0xff] }
 0x10f   : > { %v700_v35 = vld [vmem:[%s1702_s29 + $0x7b0] sm:$0xff]  ;;  %v701_v38 = vld [vmem:[%s1702_s29 + $0x7b8] sm:$0xff]  ;;  %v446_v39 = vld [vmem:[%s1695_s30 + $0x7c0] sm:$0xff] }
 0x110   : > { %1209 = vst [vmem:[%s1717_s20 + $0x798] sm:$0xff] %v953_v28  ;;  %v956_v37 = vadd.f32 %v700_v35, %v444_v34  ;;  %v702_v40 = vld [vmem:[%s1702_s29 + $0x7c0] sm:$0xff]  ;;  %1210 = vst [vmem:[%s1717_s20 + $0x7a0] sm:$0xff] %v954_v32  ;;  %v957_v41 = vadd.f32 %v701_v38, %v445_v36  ;;  %v447_v43 = vld [vmem:[%s1695_s30 + $0x7c8] sm:$0xff] }
 0x111   : > { %1211 = vst [vmem:[%s1717_s20 + $0x7a8] sm:$0xff] %v955_v33  ;;  %v958_v42 = vadd.f32 %v702_v40, %v446_v39  ;;  %v703_v44 = vld [vmem:[%s1702_s29 + $0x7c8] sm:$0xff]  ;;  %v448_v45 = vld [vmem:[%s1695_s30 + $0x7d0] sm:$0xff]  ;;  %v449_v48 = vld [vmem:[%s1695_s30 + $0x7d8] sm:$0xff] }
 0x112   : > { %1212 = vst [vmem:[%s1717_s20 + $0x7b0] sm:$0xff] %v956_v37  ;;  %v959_v46 = vadd.f32 %v703_v44, %v447_v43  ;;  %v704_v47 = vld [vmem:[%s1702_s29 + $0x7d0] sm:$0xff]  ;;  %v705_v49 = vld [vmem:[%s1702_s29 + $0x7d8] sm:$0xff]  ;;  %1213 = vst [vmem:[%s1717_s20 + $0x7b8] sm:$0xff] %v957_v41 }
 0x113   : > { %1214 = vst [vmem:[%s1717_s20 + $0x7c0] sm:$0xff] %v958_v42  ;;  %v960_v50 = vadd.f32 %v704_v47, %v448_v45  ;;  %v961_v51 = vadd.f32 %v705_v49, %v449_v48  ;;  %v450_v52 = vld [vmem:[%s1695_s30 + $0x7e0] sm:$0xff]  ;;  %v451_v54 = vld [vmem:[%s1695_s30 + $0x7e8] sm:$0xff]  ;;  %v452_v57 = vld [vmem:[%s1695_s30 + $0x7f0] sm:$0xff] }
 0x114   : > { %v706_v53 = vld [vmem:[%s1702_s29 + $0x7e0] sm:$0xff]  ;;  %1215 = vst [vmem:[%s1717_s20 + $0x7c8] sm:$0xff] %v959_v46  ;;  %v707_v56 = vld [vmem:[%s1702_s29 + $0x7e8] sm:$0xff]  ;;  %v708_v58 = vld [vmem:[%s1702_s29 + $0x7f0] sm:$0xff] }
 0x115   : > { %v962_v55 = vadd.f32 %v706_v53, %v450_v52  ;;  %1216 = vst [vmem:[%s1717_s20 + $0x7d0] sm:$0xff] %v960_v50  ;;  %1217 = vst [vmem:[%s1717_s20 + $0x7d8] sm:$0xff] %v961_v51  ;;  %v963_v59 = vadd.f32 %v707_v56, %v451_v54  ;;  %v964_v60 = vadd.f32 %v708_v58, %v452_v57  ;;  %v453_v61 = vld [vmem:[%s1695_s30 + $0x7f8] sm:$0xff] }
 0x116   : > { %v709_v62 = vld [vmem:[%s1702_s29 + $0x7f8] sm:$0xff] }
 0x117   : > { %1218 = vst [vmem:[%s1717_s20 + $0x7e0] sm:$0xff] %v962_v55  ;;  %v965_v63 = vadd.f32 %v709_v62, %v453_v61  ;;  %1219 = vst [vmem:[%s1717_s20 + $0x7e8] sm:$0xff] %v963_v59 }
 0x118   : > { %1220 = vst [vmem:[%s1717_s20 + $0x7f0] sm:$0xff] %v964_v60 }
 0x119   : > { %1221 = vst [vmem:[%s1717_s20 + $0x7f8] sm:$0xff] %v965_v63 }
 0x11a   : > { %1471 = shalt.err (!%p1468_p5)
}
 0x11b   : > { %s1472_s23 = scalar_lea.hbm %s2480_s4, 32768  ;;  %s1476_s5 = scalar_lea.hbm %s2527_s2, 131072 }
 0x11c   : > { %p1473_p13 = scmp.ne.s32.totalorder %s2480_s4, %s1472_s23  ;;  %p1477_p11 = scmp.lt.s32.totalorder %s2480_s4, %s2527_s2 }
 0x11d   : > { %p1478_p0 = scmp.lt.s32.totalorder %s1476_s5, %s1472_s23 }
 0x11e   : > { %p1474_p4 = pnand %p1473_p13, %p2540_p12 }
 0x11f   : > { %p1479_p2 = por %p1478_p0, %p1477_p11 }
 0x120   : > { %p1475_p10 = pneg %p1474_p4 }
 0x122   : > { %p1480_p6 = pnand %p1479_p2, %p1475_p10 }
 0x124   : > { %1483 = shalt.err (!%p1480_p6)
}
 0x125   : > { %1355 = dma.vmem_to_hbm [thread:$0]  (%p2540_p12), %s2482_s14, 32768, %s2480_s4, %s1223_s16  }
 0x126 PF: > { %p1369_p7 = scmp.ge.s32.totalorder %s1526_s12, 2  ;;  %s1249_s30 = sand.u32 1, %s1514_s9  }
 0x127   : > { %p2541_p8 = scmp.ne.s32.totalorder %s2533_s22, 0  ;;  %s1250_s3 = scalar_lea.sflag [#allocation4], %s1249_s30 }
 0x129   : > { %p1365_p9 = pnand %p1369_p7, %p2541_p8 }
 0x12b   : > { %p1366_p1 = pneg %p1365_p9 }
 0x12d   : > { %1509 = dma.done.wait (%p1366_p1), %s1250_s3, 32768  }
 0x12e   : > { %1511 = vsyncadd (%p1366_p1), %s1250_s3, 4294934528  ;;  %p18_p3 = scmp.ge.s32.totalorder %s1571_s15, 6   ;;  %s2542_s9 = smov %s1518_s10 }
 0x12f   : > { %s2543_s10 = smov %s1522_s11  ;;  %s2544_s11 = smov %s1583_s18 }
 0x130   : > { %s2545_s12 = smov %s1571_s15  ;;  %20 = sbr.rel (!%p18_p3) target bundleno = 7 (0x7), region = 86 }
 0x135   :  { %1255 = vsyncpa [#allocation3], 1 }
 0x136   :  { %1257 = vsyncpa [#allocation3 + $0x1], 1 }
 0x137   :  { %1258 = vsyncpa [#allocation6], 1 }
 0x138   :  { %1260 = vsyncpa [#allocation6 + $0x1], 1 }
 0x139   :  { %1261 = vsyncpa [#allocation4], 1 }
 0x13a   :  { %1263 = vsyncpa [#allocation4 + $0x1], 1 }

</bundles_post_ra>
